<compile_context>
chip_gen: v6e
topology: v6e:2x2x1
jax: 0.10.0
libtpu: 0.0.40
codegen_flags: <defaults>
</compile_context>

<pallas_src>
import functools

import jax
import jax.numpy as jnp
from jax import lax
from jax.experimental import pallas as pl
from jax.experimental.pallas import tpu as pltpu


# ---------------------------------------------------------------------------
# Fused kernel: one grid step == one batch element.
#   x_ref    : [1, N, dim]            (input block)
#   wqkv_ref : [dim, 3*inner_dim]     (resident: concat of W_q^T | W_k^T | W_v^T)
#   wo_ref   : [inner_dim, dim]       (resident: W_o^T)
#   bo_ref   : [1, dim]               (resident: out-proj bias)
#   o_ref    : [1, N, dim]            (output block)
#   ctx_ref  : [N, inner_dim] f32     (VMEM scratch for the merged-head context)
# ---------------------------------------------------------------------------
def fused_attention_kernel(x_ref, wqkv_ref, wo_ref, bo_ref, o_ref, ctx_ref,
                           *, heads, dim_head, scale):
    inner = heads * dim_head
    x = x_ref[0]                                     # [N, dim], native dtype

    # Fused QKV projection: single lane-dense matmul, f32 accumulation on MXU,
    # result cast back to the model dtype for the downstream MXU ops.
    qkv = jnp.dot(x, wqkv_ref[...],
                  preferred_element_type=jnp.float32).astype(x.dtype)  # [N, 3*inner]

    # Per-head scaled-dot-product attention, heads addressed by static slices
    # inside VMEM (no HBM transpose / rearrange).
    for h in range(heads):
        q_h = qkv[:, h * dim_head:(h + 1) * dim_head]                      # [N, dh]
        k_h = qkv[:, inner + h * dim_head: inner + (h + 1) * dim_head]     # [N, dh]
        v_h = qkv[:, 2 * inner + h * dim_head: 2 * inner + (h + 1) * dim_head]

        # Contract on dh directly (no k.T materialization).
        s = lax.dot_general(q_h, k_h, (((1,), (1,)), ((), ())),
                            preferred_element_type=jnp.float32) * scale    # [N, N] f32
        m = jnp.max(s, axis=-1, keepdims=True)
        p = jnp.exp(s - m)
        p = p * pl.reciprocal(jnp.sum(p, axis=-1, keepdims=True), approx=True)

        ctx_ref[:, h * dim_head:(h + 1) * dim_head] = jnp.dot(
            p.astype(v_h.dtype), v_h, preferred_element_type=jnp.float32)  # [N, dh]

    # Output projection + bias (to_out = Linear(inner_dim, dim); Dropout(0.0) is identity).
    ctx = ctx_ref[...].astype(x.dtype)                                     # [N, inner]
    out = jnp.dot(ctx, wo_ref[...], preferred_element_type=jnp.float32)
    out = out + bo_ref[...].astype(jnp.float32)
    o_ref[0] = out.astype(o_ref.dtype)
    # TODO(synk): for long sequences (N >~ 2K) switch the in-kernel softmax to a
    # flash-style KV-block loop (online m/l/acc) so the [N, N] scores never
    # materialize; not needed at these shapes.


# ---------------------------------------------------------------------------
# Module wrapper (parameter setup + one-time weight fusion = glue in plain JAX).
# ---------------------------------------------------------------------------
def init_attention_params(key, dim, heads, dim_head, dtype=jnp.float32):
    inner_dim = heads * dim_head
    ks = jax.random.split(key, 5)

    def uniform(k, shape, fan_in):
        bound = 1.0 / jnp.sqrt(fan_in)
        return jax.random.uniform(k, shape, dtype, -bound, bound)

    return {
        # PyTorch nn.Linear layout: [out_features, in_features]
        "w_q": uniform(ks[0], (inner_dim, dim), dim),      # bias=False
        "w_k": uniform(ks[1], (inner_dim, dim), dim),      # bias=False
        "w_v": uniform(ks[2], (inner_dim, dim), dim),      # bias=False
        "w_o": uniform(ks[3], (dim, inner_dim), inner_dim),
        "b_o": uniform(ks[4], (dim,), inner_dim),
    }


def attention_forward(params, x, heads, dim_head):
    """x: [B, N, dim] -> [B, N, dim]. Matches Attention.forward(x) (no kv/mask)."""
    B, N, dim = x.shape
    inner_dim = heads * dim_head
    scale = float(dim_head) ** (-0.5)

    # One-time fusion of the three projection weights: [dim, 3*inner_dim].
    w_qkv = jnp.concatenate(
        [params["w_q"].T, params["w_k"].T, params["w_v"].T], axis=1)
    w_o = params["w_o"].T                       # [inner_dim, dim]
    b_o = params["b_o"].reshape(1, dim)

    kernel = functools.partial(
        fused_attention_kernel, heads=heads, dim_head=dim_head, scale=scale)

    return pl.pallas_call(
        kernel,
        out_shape=jax.ShapeDtypeStruct((B, N, dim), x.dtype),
        grid=(B,),
        in_specs=[
            pl.BlockSpec((1, N, dim), lambda b: (b, 0, 0)),          # x
            pl.BlockSpec((dim, 3 * inner_dim), lambda b: (0, 0)),    # fused QKV weight
            pl.BlockSpec((inner_dim, dim), lambda b: (0, 0)),        # out weight
            pl.BlockSpec((1, dim), lambda b: (0, 0)),                # out bias
        ],
        out_specs=pl.BlockSpec((1, N, dim), lambda b: (b, 0, 0)),
        scratch_shapes=[pltpu.VMEM((N, inner_dim), jnp.float32)],
        compiler_params=pltpu.CompilerParams(
            dimension_semantics=("parallel",)),
    )(x, w_qkv, w_o, b_o)


# Pure-JAX reference for correctness check.
def attention_reference(params, x, heads, dim_head):
    B, N, dim = x.shape
    scale = float(dim_head) ** (-0.5)
    q = x @ params["w_q"].T
    k = x @ params["w_k"].T
    v = x @ params["w_v"].T

    def split_heads(t):
        return t.reshape(B, N, heads, dim_head).transpose(0, 2, 1, 3)

    q, k, v = split_heads(q), split_heads(k), split_heads(v)
    s = jnp.einsum("bhnd,bhmd->bhnm", q, k) * scale
    p = jax.nn.softmax(s, axis=-1)
    ctx = jnp.einsum("bhnm,bhmd->bhnd", p, v)
    ctx = ctx.transpose(0, 2, 1, 3).reshape(B, N, heads * dim_head)
    return ctx @ params["w_o"].T + params["b_o"]


if __name__ == "__main__":
    # Small shapes consistent with the module defaults (heads=8, dim_head=64).
    B, N, dim = 2, 8, 64
    heads, dim_head = 8, 64

    key = jax.random.PRNGKey(0)
    k_param, k_x = jax.random.split(key)
    params = init_attention_params(k_param, dim, heads, dim_head)
    x = jax.random.normal(k_x, (B, N, dim), jnp.float32)

    out = attention_forward(params, x, heads, dim_head)
    out = jax.block_until_ready(out)

    ref = attention_reference(params, x, heads, dim_head)
    assert out.shape == (B, N, dim)
    # Slightly loose tolerance: approx reciprocal (EUP) in the softmax denominator.
    assert jnp.allclose(out, ref, atol=5e-3, rtol=5e-3), "mismatch vs reference"

    print("KERNEL_OK")
</pallas_src>

<mosaic_0001>
module attributes {stable_mosaic.version = 11 : i64} {
  func.func @fused_attention_kernel(%arg0: i32, %arg1: memref<1x8x64xf32, #tpu.memory_space<vmem>>, %arg2: memref<64x1536xf32, #tpu.memory_space<vmem>>, %arg3: memref<512x64xf32, #tpu.memory_space<vmem>>, %arg4: memref<1x64xf32, #tpu.memory_space<vmem>>, %arg5: memref<1x8x64xf32, #tpu.memory_space<vmem>>, %arg6: memref<8x512xf32, #tpu.memory_space<vmem>>) attributes {dimension_semantics = [#tpu.dimension_semantics<parallel>], iteration_bounds = array<i64: 2>, scalar_prefetch = 0 : i64, scratch_operands = 1 : i64, tpu.core_type = #tpu.core_type<tc>, window_params = [{transform_indices = @transform_0, window_bounds = array<i64: 1, 8, 64>}, {pipeline_mode = #tpu.pipeline_mode<synchronous>, transform_indices = @transform_1, window_bounds = array<i64: 64, 1536>}, {pipeline_mode = #tpu.pipeline_mode<synchronous>, transform_indices = @transform_2, window_bounds = array<i64: 512, 64>}, {pipeline_mode = #tpu.pipeline_mode<synchronous>, transform_indices = @transform_3, window_bounds = array<i64: 1, 64>}, {transform_indices = @transform_4, window_bounds = array<i64: 1, 8, 64>}]} {
    %c0 = arith.constant 0 : index
    %c0_0 = arith.constant 0 : index
    %c0_1 = arith.constant 0 : index
    %0 = vector.load %arg1[%c0, %c0_0, %c0_1] : memref<1x8x64xf32, #tpu.memory_space<vmem>>, vector<1x8x64xf32>
    %1 = vector.shape_cast %0 : vector<1x8x64xf32> to vector<8x64xf32>
    %c0_2 = arith.constant 0 : index
    %c0_3 = arith.constant 0 : index
    %2 = vector.load %arg2[%c0_2, %c0_3] : memref<64x1536xf32, #tpu.memory_space<vmem>>, vector<64x1536xf32>
    %cst = arith.constant dense<0.000000e+00> : vector<8x1536xf32>
    %3 = tpu.matmul %1, %2, %cst {dimension_numbers = #tpu.dot_dimension_numbers<[1], [0], [0], [1], [0, 0, 1, 1], [], []>} : vector<8x64xf32>, vector<64x1536xf32>, vector<8x1536xf32> -> vector<8x1536xf32>
    %4 = vector.extract_strided_slice %3 {offsets = [0, 0], sizes = [8, 64], strides = [1, 1]} : vector<8x1536xf32> to vector<8x64xf32>
    %5 = vector.extract_strided_slice %3 {offsets = [0, 512], sizes = [8, 64], strides = [1, 1]} : vector<8x1536xf32> to vector<8x64xf32>
    %6 = vector.extract_strided_slice %3 {offsets = [0, 1024], sizes = [8, 64], strides = [1, 1]} : vector<8x1536xf32> to vector<8x64xf32>
    %cst_4 = arith.constant dense<0.000000e+00> : vector<8x8xf32>
    %7 = tpu.matmul %4, %5, %cst_4 {dimension_numbers = #tpu.dot_dimension_numbers<[1], [1], [0], [0], [0, 0, 1, 0], [], []>} : vector<8x64xf32>, vector<8x64xf32>, vector<8x8xf32> -> vector<8x8xf32>
    %cst_5 = arith.constant 1.250000e-01 : f32
    %8 = vector.broadcast %cst_5 : f32 to vector<8x8xf32>
    %9 = arith.mulf %7, %8 : vector<8x8xf32>
    %cst_6 = arith.constant dense<0xFF800000> : vector<8xf32>
    %10 = vector.multi_reduction <maximumf>, %9, %cst_6 [1] : vector<8x8xf32> to vector<8xf32>
    %11 = vector.shape_cast %10 : vector<8xf32> to vector<8x1xf32>
    %12 = vector.broadcast %11 : vector<8x1xf32> to vector<8x8xf32>
    %13 = arith.subf %9, %12 : vector<8x8xf32>
    %14 = math.exp %13 : vector<8x8xf32>
    %cst_7 = arith.constant dense<0.000000e+00> : vector<8xf32>
    %15 = vector.multi_reduction <add>, %14, %cst_7 [1] : vector<8x8xf32> to vector<8xf32>
    %16 = vector.shape_cast %15 : vector<8xf32> to vector<8x1xf32>
    %17 = tpu.reciprocal %16 {approx = true} : vector<8x1xf32> -> vector<8x1xf32>
    %18 = vector.broadcast %17 : vector<8x1xf32> to vector<8x8xf32>
    %19 = arith.mulf %14, %18 : vector<8x8xf32>
    %cst_8 = arith.constant dense<0.000000e+00> : vector<8x64xf32>
    %20 = tpu.matmul %19, %6, %cst_8 {dimension_numbers = #tpu.dot_dimension_numbers<[1], [0], [0], [1], [0, 0, 1, 1], [], []>} : vector<8x8xf32>, vector<8x64xf32>, vector<8x64xf32> -> vector<8x64xf32>
    %c0_9 = arith.constant 0 : index
    %c0_10 = arith.constant 0 : index
    %21 = vector.load %arg6[%c0_9, %c0_10] : memref<8x512xf32, #tpu.memory_space<vmem>>, vector<8x64xf32>
    tpu.vector_store %arg6[%c0_9, %c0_10], %20 {strides = array<i32>} : memref<8x512xf32, #tpu.memory_space<vmem>>, vector<8x64xf32>,
    %22 = vector.extract_strided_slice %3 {offsets = [0, 64], sizes = [8, 64], strides = [1, 1]} : vector<8x1536xf32> to vector<8x64xf32>
    %23 = vector.extract_strided_slice %3 {offsets = [0, 576], sizes = [8, 64], strides = [1, 1]} : vector<8x1536xf32> to vector<8x64xf32>
    %24 = vector.extract_strided_slice %3 {offsets = [0, 1088], sizes = [8, 64], strides = [1, 1]} : vector<8x1536xf32> to vector<8x64xf32>
    %cst_11 = arith.constant dense<0.000000e+00> : vector<8x8xf32>
    %25 = tpu.matmul %22, %23, %cst_11 {dimension_numbers = #tpu.dot_dimension_numbers<[1], [1], [0], [0], [0, 0, 1, 0], [], []>} : vector<8x64xf32>, vector<8x64xf32>, vector<8x8xf32> -> vector<8x8xf32>
    %cst_12 = arith.constant 1.250000e-01 : f32
    %26 = vector.broadcast %cst_12 : f32 to vector<8x8xf32>
    %27 = arith.mulf %25, %26 : vector<8x8xf32>
    %cst_13 = arith.constant dense<0xFF800000> : vector<8xf32>
    %28 = vector.multi_reduction <maximumf>, %27, %cst_13 [1] : vector<8x8xf32> to vector<8xf32>
    %29 = vector.shape_cast %28 : vector<8xf32> to vector<8x1xf32>
    %30 = vector.broadcast %29 : vector<8x1xf32> to vector<8x8xf32>
    %31 = arith.subf %27, %30 : vector<8x8xf32>
    %32 = math.exp %31 : vector<8x8xf32>
    %cst_14 = arith.constant dense<0.000000e+00> : vector<8xf32>
    %33 = vector.multi_reduction <add>, %32, %cst_14 [1] : vector<8x8xf32> to vector<8xf32>
    %34 = vector.shape_cast %33 : vector<8xf32> to vector<8x1xf32>
    %35 = tpu.reciprocal %34 {approx = true} : vector<8x1xf32> -> vector<8x1xf32>
    %36 = vector.broadcast %35 : vector<8x1xf32> to vector<8x8xf32>
    %37 = arith.mulf %32, %36 : vector<8x8xf32>
    %cst_15 = arith.constant dense<0.000000e+00> : vector<8x64xf32>
    %38 = tpu.matmul %37, %24, %cst_15 {dimension_numbers = #tpu.dot_dimension_numbers<[1], [0], [0], [1], [0, 0, 1, 1], [], []>} : vector<8x8xf32>, vector<8x64xf32>, vector<8x64xf32> -> vector<8x64xf32>
    %c0_16 = arith.constant 0 : index
    %c64 = arith.constant 64 : index
    %39 = vector.load %arg6[%c0_16, %c64] : memref<8x512xf32, #tpu.memory_space<vmem>>, vector<8x64xf32>
    tpu.vector_store %arg6[%c0_16, %c64], %38 {strides = array<i32>} : memref<8x512xf32, #tpu.memory_space<vmem>>, vector<8x64xf32>,
    %40 = vector.extract_strided_slice %3 {offsets = [0, 128], sizes = [8, 64], strides = [1, 1]} : vector<8x1536xf32> to vector<8x64xf32>
    %41 = vector.extract_strided_slice %3 {offsets = [0, 640], sizes = [8, 64], strides = [1, 1]} : vector<8x1536xf32> to vector<8x64xf32>
    %42 = vector.extract_strided_slice %3 {offsets = [0, 1152], sizes = [8, 64], strides = [1, 1]} : vector<8x1536xf32> to vector<8x64xf32>
    %cst_17 = arith.constant dense<0.000000e+00> : vector<8x8xf32>
    %43 = tpu.matmul %40, %41, %cst_17 {dimension_numbers = #tpu.dot_dimension_numbers<[1], [1], [0], [0], [0, 0, 1, 0], [], []>} : vector<8x64xf32>, vector<8x64xf32>, vector<8x8xf32> -> vector<8x8xf32>
    %cst_18 = arith.constant 1.250000e-01 : f32
    %44 = vector.broadcast %cst_18 : f32 to vector<8x8xf32>
    %45 = arith.mulf %43, %44 : vector<8x8xf32>
    %cst_19 = arith.constant dense<0xFF800000> : vector<8xf32>
    %46 = vector.multi_reduction <maximumf>, %45, %cst_19 [1] : vector<8x8xf32> to vector<8xf32>
    %47 = vector.shape_cast %46 : vector<8xf32> to vector<8x1xf32>
    %48 = vector.broadcast %47 : vector<8x1xf32> to vector<8x8xf32>
    %49 = arith.subf %45, %48 : vector<8x8xf32>
    %50 = math.exp %49 : vector<8x8xf32>
    %cst_20 = arith.constant dense<0.000000e+00> : vector<8xf32>
    %51 = vector.multi_reduction <add>, %50, %cst_20 [1] : vector<8x8xf32> to vector<8xf32>
    %52 = vector.shape_cast %51 : vector<8xf32> to vector<8x1xf32>
    %53 = tpu.reciprocal %52 {approx = true} : vector<8x1xf32> -> vector<8x1xf32>
    %54 = vector.broadcast %53 : vector<8x1xf32> to vector<8x8xf32>
    %55 = arith.mulf %50, %54 : vector<8x8xf32>
    %cst_21 = arith.constant dense<0.000000e+00> : vector<8x64xf32>
    %56 = tpu.matmul %55, %42, %cst_21 {dimension_numbers = #tpu.dot_dimension_numbers<[1], [0], [0], [1], [0, 0, 1, 1], [], []>} : vector<8x8xf32>, vector<8x64xf32>, vector<8x64xf32> -> vector<8x64xf32>
    %c0_22 = arith.constant 0 : index
    %c128 = arith.constant 128 : index
    %57 = vector.load %arg6[%c0_22, %c128] : memref<8x512xf32, #tpu.memory_space<vmem>>, vector<8x64xf32>
    tpu.vector_store %arg6[%c0_22, %c128], %56 {strides = array<i32>} : memref<8x512xf32, #tpu.memory_space<vmem>>, vector<8x64xf32>,
    %58 = vector.extract_strided_slice %3 {offsets = [0, 192], sizes = [8, 64], strides = [1, 1]} : vector<8x1536xf32> to vector<8x64xf32>
    %59 = vector.extract_strided_slice %3 {offsets = [0, 704], sizes = [8, 64], strides = [1, 1]} : vector<8x1536xf32> to vector<8x64xf32>
    %60 = vector.extract_strided_slice %3 {offsets = [0, 1216], sizes = [8, 64], strides = [1, 1]} : vector<8x1536xf32> to vector<8x64xf32>
    %cst_23 = arith.constant dense<0.000000e+00> : vector<8x8xf32>
    %61 = tpu.matmul %58, %59, %cst_23 {dimension_numbers = #tpu.dot_dimension_numbers<[1], [1], [0], [0], [0, 0, 1, 0], [], []>} : vector<8x64xf32>, vector<8x64xf32>, vector<8x8xf32> -> vector<8x8xf32>
    %cst_24 = arith.constant 1.250000e-01 : f32
    %62 = vector.broadcast %cst_24 : f32 to vector<8x8xf32>
    %63 = arith.mulf %61, %62 : vector<8x8xf32>
    %cst_25 = arith.constant dense<0xFF800000> : vector<8xf32>
    %64 = vector.multi_reduction <maximumf>, %63, %cst_25 [1] : vector<8x8xf32> to vector<8xf32>
    %65 = vector.shape_cast %64 : vector<8xf32> to vector<8x1xf32>
    %66 = vector.broadcast %65 : vector<8x1xf32> to vector<8x8xf32>
    %67 = arith.subf %63, %66 : vector<8x8xf32>
    %68 = math.exp %67 : vector<8x8xf32>
    %cst_26 = arith.constant dense<0.000000e+00> : vector<8xf32>
    %69 = vector.multi_reduction <add>, %68, %cst_26 [1] : vector<8x8xf32> to vector<8xf32>
    %70 = vector.shape_cast %69 : vector<8xf32> to vector<8x1xf32>
    %71 = tpu.reciprocal %70 {approx = true} : vector<8x1xf32> -> vector<8x1xf32>
    %72 = vector.broadcast %71 : vector<8x1xf32> to vector<8x8xf32>
    %73 = arith.mulf %68, %72 : vector<8x8xf32>
    %cst_27 = arith.constant dense<0.000000e+00> : vector<8x64xf32>
    %74 = tpu.matmul %73, %60, %cst_27 {dimension_numbers = #tpu.dot_dimension_numbers<[1], [0], [0], [1], [0, 0, 1, 1], [], []>} : vector<8x8xf32>, vector<8x64xf32>, vector<8x64xf32> -> vector<8x64xf32>
    %c0_28 = arith.constant 0 : index
    %c192 = arith.constant 192 : index
    %75 = vector.load %arg6[%c0_28, %c192] : memref<8x512xf32, #tpu.memory_space<vmem>>, vector<8x64xf32>
    tpu.vector_store %arg6[%c0_28, %c192], %74 {strides = array<i32>} : memref<8x512xf32, #tpu.memory_space<vmem>>, vector<8x64xf32>,
    %76 = vector.extract_strided_slice %3 {offsets = [0, 256], sizes = [8, 64], strides = [1, 1]} : vector<8x1536xf32> to vector<8x64xf32>
    %77 = vector.extract_strided_slice %3 {offsets = [0, 768], sizes = [8, 64], strides = [1, 1]} : vector<8x1536xf32> to vector<8x64xf32>
    %78 = vector.extract_strided_slice %3 {offsets = [0, 1280], sizes = [8, 64], strides = [1, 1]} : vector<8x1536xf32> to vector<8x64xf32>
    %cst_29 = arith.constant dense<0.000000e+00> : vector<8x8xf32>
    %79 = tpu.matmul %76, %77, %cst_29 {dimension_numbers = #tpu.dot_dimension_numbers<[1], [1], [0], [0], [0, 0, 1, 0], [], []>} : vector<8x64xf32>, vector<8x64xf32>, vector<8x8xf32> -> vector<8x8xf32>
    %cst_30 = arith.constant 1.250000e-01 : f32
    %80 = vector.broadcast %cst_30 : f32 to vector<8x8xf32>
    %81 = arith.mulf %79, %80 : vector<8x8xf32>
    %cst_31 = arith.constant dense<0xFF800000> : vector<8xf32>
    %82 = vector.multi_reduction <maximumf>, %81, %cst_31 [1] : vector<8x8xf32> to vector<8xf32>
    %83 = vector.shape_cast %82 : vector<8xf32> to vector<8x1xf32>
    %84 = vector.broadcast %83 : vector<8x1xf32> to vector<8x8xf32>
    %85 = arith.subf %81, %84 : vector<8x8xf32>
    %86 = math.exp %85 : vector<8x8xf32>
    %cst_32 = arith.constant dense<0.000000e+00> : vector<8xf32>
    %87 = vector.multi_reduction <add>, %86, %cst_32 [1] : vector<8x8xf32> to vector<8xf32>
    %88 = vector.shape_cast %87 : vector<8xf32> to vector<8x1xf32>
    %89 = tpu.reciprocal %88 {approx = true} : vector<8x1xf32> -> vector<8x1xf32>
    %90 = vector.broadcast %89 : vector<8x1xf32> to vector<8x8xf32>
    %91 = arith.mulf %86, %90 : vector<8x8xf32>
    %cst_33 = arith.constant dense<0.000000e+00> : vector<8x64xf32>
    %92 = tpu.matmul %91, %78, %cst_33 {dimension_numbers = #tpu.dot_dimension_numbers<[1], [0], [0], [1], [0, 0, 1, 1], [], []>} : vector<8x8xf32>, vector<8x64xf32>, vector<8x64xf32> -> vector<8x64xf32>
    %c0_34 = arith.constant 0 : index
    %c256 = arith.constant 256 : index
    %93 = vector.load %arg6[%c0_34, %c256] : memref<8x512xf32, #tpu.memory_space<vmem>>, vector<8x64xf32>
    tpu.vector_store %arg6[%c0_34, %c256], %92 {strides = array<i32>} : memref<8x512xf32, #tpu.memory_space<vmem>>, vector<8x64xf32>,
    %94 = vector.extract_strided_slice %3 {offsets = [0, 320], sizes = [8, 64], strides = [1, 1]} : vector<8x1536xf32> to vector<8x64xf32>
    %95 = vector.extract_strided_slice %3 {offsets = [0, 832], sizes = [8, 64], strides = [1, 1]} : vector<8x1536xf32> to vector<8x64xf32>
    %96 = vector.extract_strided_slice %3 {offsets = [0, 1344], sizes = [8, 64], strides = [1, 1]} : vector<8x1536xf32> to vector<8x64xf32>
    %cst_35 = arith.constant dense<0.000000e+00> : vector<8x8xf32>
    %97 = tpu.matmul %94, %95, %cst_35 {dimension_numbers = #tpu.dot_dimension_numbers<[1], [1], [0], [0], [0, 0, 1, 0], [], []>} : vector<8x64xf32>, vector<8x64xf32>, vector<8x8xf32> -> vector<8x8xf32>
    %cst_36 = arith.constant 1.250000e-01 : f32
    %98 = vector.broadcast %cst_36 : f32 to vector<8x8xf32>
    %99 = arith.mulf %97, %98 : vector<8x8xf32>
    %cst_37 = arith.constant dense<0xFF800000> : vector<8xf32>
    %100 = vector.multi_reduction <maximumf>, %99, %cst_37 [1] : vector<8x8xf32> to vector<8xf32>
    %101 = vector.shape_cast %100 : vector<8xf32> to vector<8x1xf32>
    %102 = vector.broadcast %101 : vector<8x1xf32> to vector<8x8xf32>
    %103 = arith.subf %99, %102 : vector<8x8xf32>
    %104 = math.exp %103 : vector<8x8xf32>
    %cst_38 = arith.constant dense<0.000000e+00> : vector<8xf32>
    %105 = vector.multi_reduction <add>, %104, %cst_38 [1] : vector<8x8xf32> to vector<8xf32>
    %106 = vector.shape_cast %105 : vector<8xf32> to vector<8x1xf32>
    %107 = tpu.reciprocal %106 {approx = true} : vector<8x1xf32> -> vector<8x1xf32>
    %108 = vector.broadcast %107 : vector<8x1xf32> to vector<8x8xf32>
    %109 = arith.mulf %104, %108 : vector<8x8xf32>
    %cst_39 = arith.constant dense<0.000000e+00> : vector<8x64xf32>
    %110 = tpu.matmul %109, %96, %cst_39 {dimension_numbers = #tpu.dot_dimension_numbers<[1], [0], [0], [1], [0, 0, 1, 1], [], []>} : vector<8x8xf32>, vector<8x64xf32>, vector<8x64xf32> -> vector<8x64xf32>
    %c0_40 = arith.constant 0 : index
    %c320 = arith.constant 320 : index
    %111 = vector.load %arg6[%c0_40, %c320] : memref<8x512xf32, #tpu.memory_space<vmem>>, vector<8x64xf32>
    tpu.vector_store %arg6[%c0_40, %c320], %110 {strides = array<i32>} : memref<8x512xf32, #tpu.memory_space<vmem>>, vector<8x64xf32>,
    %112 = vector.extract_strided_slice %3 {offsets = [0, 384], sizes = [8, 64], strides = [1, 1]} : vector<8x1536xf32> to vector<8x64xf32>
    %113 = vector.extract_strided_slice %3 {offsets = [0, 896], sizes = [8, 64], strides = [1, 1]} : vector<8x1536xf32> to vector<8x64xf32>
    %114 = vector.extract_strided_slice %3 {offsets = [0, 1408], sizes = [8, 64], strides = [1, 1]} : vector<8x1536xf32> to vector<8x64xf32>
    %cst_41 = arith.constant dense<0.000000e+00> : vector<8x8xf32>
    %115 = tpu.matmul %112, %113, %cst_41 {dimension_numbers = #tpu.dot_dimension_numbers<[1], [1], [0], [0], [0, 0, 1, 0], [], []>} : vector<8x64xf32>, vector<8x64xf32>, vector<8x8xf32> -> vector<8x8xf32>
    %cst_42 = arith.constant 1.250000e-01 : f32
    %116 = vector.broadcast %cst_42 : f32 to vector<8x8xf32>
    %117 = arith.mulf %115, %116 : vector<8x8xf32>
    %cst_43 = arith.constant dense<0xFF800000> : vector<8xf32>
    %118 = vector.multi_reduction <maximumf>, %117, %cst_43 [1] : vector<8x8xf32> to vector<8xf32>
    %119 = vector.shape_cast %118 : vector<8xf32> to vector<8x1xf32>
    %120 = vector.broadcast %119 : vector<8x1xf32> to vector<8x8xf32>
    %121 = arith.subf %117, %120 : vector<8x8xf32>
    %122 = math.exp %121 : vector<8x8xf32>
    %cst_44 = arith.constant dense<0.000000e+00> : vector<8xf32>
    %123 = vector.multi_reduction <add>, %122, %cst_44 [1] : vector<8x8xf32> to vector<8xf32>
    %124 = vector.shape_cast %123 : vector<8xf32> to vector<8x1xf32>
    %125 = tpu.reciprocal %124 {approx = true} : vector<8x1xf32> -> vector<8x1xf32>
    %126 = vector.broadcast %125 : vector<8x1xf32> to vector<8x8xf32>
    %127 = arith.mulf %122, %126 : vector<8x8xf32>
    %cst_45 = arith.constant dense<0.000000e+00> : vector<8x64xf32>
    %128 = tpu.matmul %127, %114, %cst_45 {dimension_numbers = #tpu.dot_dimension_numbers<[1], [0], [0], [1], [0, 0, 1, 1], [], []>} : vector<8x8xf32>, vector<8x64xf32>, vector<8x64xf32> -> vector<8x64xf32>
    %c0_46 = arith.constant 0 : index
    %c384 = arith.constant 384 : index
    %129 = vector.load %arg6[%c0_46, %c384] : memref<8x512xf32, #tpu.memory_space<vmem>>, vector<8x64xf32>
    tpu.vector_store %arg6[%c0_46, %c384], %128 {strides = array<i32>} : memref<8x512xf32, #tpu.memory_space<vmem>>, vector<8x64xf32>,
    %130 = vector.extract_strided_slice %3 {offsets = [0, 448], sizes = [8, 64], strides = [1, 1]} : vector<8x1536xf32> to vector<8x64xf32>
    %131 = vector.extract_strided_slice %3 {offsets = [0, 960], sizes = [8, 64], strides = [1, 1]} : vector<8x1536xf32> to vector<8x64xf32>
    %132 = vector.extract_strided_slice %3 {offsets = [0, 1472], sizes = [8, 64], strides = [1, 1]} : vector<8x1536xf32> to vector<8x64xf32>
    %cst_47 = arith.constant dense<0.000000e+00> : vector<8x8xf32>
    %133 = tpu.matmul %130, %131, %cst_47 {dimension_numbers = #tpu.dot_dimension_numbers<[1], [1], [0], [0], [0, 0, 1, 0], [], []>} : vector<8x64xf32>, vector<8x64xf32>, vector<8x8xf32> -> vector<8x8xf32>
    %cst_48 = arith.constant 1.250000e-01 : f32
    %134 = vector.broadcast %cst_48 : f32 to vector<8x8xf32>
    %135 = arith.mulf %133, %134 : vector<8x8xf32>
    %cst_49 = arith.constant dense<0xFF800000> : vector<8xf32>
    %136 = vector.multi_reduction <maximumf>, %135, %cst_49 [1] : vector<8x8xf32> to vector<8xf32>
    %137 = vector.shape_cast %136 : vector<8xf32> to vector<8x1xf32>
    %138 = vector.broadcast %137 : vector<8x1xf32> to vector<8x8xf32>
    %139 = arith.subf %135, %138 : vector<8x8xf32>
    %140 = math.exp %139 : vector<8x8xf32>
    %cst_50 = arith.constant dense<0.000000e+00> : vector<8xf32>
    %141 = vector.multi_reduction <add>, %140, %cst_50 [1] : vector<8x8xf32> to vector<8xf32>
    %142 = vector.shape_cast %141 : vector<8xf32> to vector<8x1xf32>
    %143 = tpu.reciprocal %142 {approx = true} : vector<8x1xf32> -> vector<8x1xf32>
    %144 = vector.broadcast %143 : vector<8x1xf32> to vector<8x8xf32>
    %145 = arith.mulf %140, %144 : vector<8x8xf32>
    %cst_51 = arith.constant dense<0.000000e+00> : vector<8x64xf32>
    %146 = tpu.matmul %145, %132, %cst_51 {dimension_numbers = #tpu.dot_dimension_numbers<[1], [0], [0], [1], [0, 0, 1, 1], [], []>} : vector<8x8xf32>, vector<8x64xf32>, vector<8x64xf32> -> vector<8x64xf32>
    %c0_52 = arith.constant 0 : index
    %c448 = arith.constant 448 : index
    %147 = vector.load %arg6[%c0_52, %c448] : memref<8x512xf32, #tpu.memory_space<vmem>>, vector<8x64xf32>
    tpu.vector_store %arg6[%c0_52, %c448], %146 {strides = array<i32>} : memref<8x512xf32, #tpu.memory_space<vmem>>, vector<8x64xf32>,
    %c0_53 = arith.constant 0 : index
    %c0_54 = arith.constant 0 : index
    %148 = vector.load %arg6[%c0_53, %c0_54] : memref<8x512xf32, #tpu.memory_space<vmem>>, vector<8x512xf32>
    %c0_55 = arith.constant 0 : index
    %c0_56 = arith.constant 0 : index
    %149 = vector.load %arg3[%c0_55, %c0_56] : memref<512x64xf32, #tpu.memory_space<vmem>>, vector<512x64xf32>
    %cst_57 = arith.constant dense<0.000000e+00> : vector<8x64xf32>
    %150 = tpu.matmul %148, %149, %cst_57 {dimension_numbers = #tpu.dot_dimension_numbers<[1], [0], [0], [1], [0, 0, 1, 1], [], []>} : vector<8x512xf32>, vector<512x64xf32>, vector<8x64xf32> -> vector<8x64xf32>
    %c0_58 = arith.constant 0 : index
    %c0_59 = arith.constant 0 : index
    %151 = vector.load %arg4[%c0_58, %c0_59] : memref<1x64xf32, #tpu.memory_space<vmem>>, vector<1x64xf32>
    %152 = vector.broadcast %151 : vector<1x64xf32> to vector<8x64xf32>
    %153 = arith.addf %150, %152 : vector<8x64xf32>
    %c0_60 = arith.constant 0 : index
    %c0_61 = arith.constant 0 : index
    %c0_62 = arith.constant 0 : index
    %154 = vector.load %arg5[%c0_60, %c0_61, %c0_62] : memref<1x8x64xf32, #tpu.memory_space<vmem>>, vector<1x8x64xf32>
    %155 = vector.shape_cast %154 : vector<1x8x64xf32> to vector<8x64xf32>
    %156 = vector.shape_cast %153 : vector<8x64xf32> to vector<1x8x64xf32>
    tpu.vector_store %arg5[%c0_60, %c0_61, %c0_62], %156 {strides = array<i32>} : memref<1x8x64xf32, #tpu.memory_space<vmem>>, vector<1x8x64xf32>,
    return
  }
  func.func @transform_0(%arg0: i32) -> (i32, i32, i32) {
    %c0_i32 = arith.constant 0 : i32
    %c0_i32_0 = arith.constant 0 : i32
    %c0_i32_1 = arith.constant 0 : i32
    return %arg0, %c0_i32, %c0_i32_0 : i32, i32, i32
  }
  func.func @transform_1(%arg0: i32) -> (i32, i32) {
    %c0_i32 = arith.constant 0 : i32
    %c0_i32_0 = arith.constant 0 : i32
    %c0_i32_1 = arith.constant 0 : i32
    return %c0_i32, %c0_i32_0 : i32, i32
  }
  func.func @transform_2(%arg0: i32) -> (i32, i32) {
    %c0_i32 = arith.constant 0 : i32
    %c0_i32_0 = arith.constant 0 : i32
    %c0_i32_1 = arith.constant 0 : i32
    return %c0_i32, %c0_i32_0 : i32, i32
  }
  func.func @transform_3(%arg0: i32) -> (i32, i32) {
    %c0_i32 = arith.constant 0 : i32
    %c0_i32_0 = arith.constant 0 : i32
    %c0_i32_1 = arith.constant 0 : i32
    return %c0_i32, %c0_i32_0 : i32, i32
  }
  func.func @transform_4(%arg0: i32) -> (i32, i32, i32) {
    %c0_i32 = arith.constant 0 : i32
    %c0_i32_0 = arith.constant 0 : i32
    %c0_i32_1 = arith.constant 0 : i32
    return %arg0, %c0_i32, %c0_i32_0 : i32, i32, i32
  }
}

</mosaic_0001>

<bundles_post_ra>
// kernel: tpu_custom_call.1
= control target key start
LH: loop header
LB: loop body
LE: loop exit
PB: predicated region body
PF: predicated region fallthrough
CT: control target
= control target key end

     0   :  { %9 = vsyncpa [#allocation4], 0  ;;  %s3604_s0 = inlined_call_operand.hbm [shape: f32[2,8,64], index: 0, kind: input, shape index: {}]   ;;  %s3605_s1 = inlined_call_operand.vmem [shape: f32[64,1536], index: 1, kind: input, shape index: {}]   ;;  %s3606_s2 = inlined_call_operand.vmem [shape: f32[512,64], index: 2, kind: input, shape index: {}]   ;;  %s3607_s3 = inlined_call_operand.vmem [shape: f32[1,64], index: 3, kind: input, shape index: {}]   ;;  %s3608_s4 = inlined_call_operand.hbm [shape: f32[2,8,64], index: 4, kind: output, shape index: {}]  }
   0x1   :  { %11 = vsyncpa [#allocation4 + $0x1], 0 }
   0x2   :  { %12 = vsyncpa [#allocation5], 0 }
   0x3   :  { %14 = vsyncpa [#allocation5 + $0x1], 0  ;;  %s2808_s15 = smov 0   ;;  %s2810_s16 = smov 0  }
   0x4   :  { %s2812_s17 = smov 0   ;;  %s2814_s18 = smov 0  }
   0x5 LB: > { %s2829_s19 = sadd.s32 4294967295, %s2776_s18   ;;  %s2378_s20 = sadd.s32 4294967294, %s2776_s18   ;;  %s2776_s18 = sphi %s2814_s18, %s3625_s18   ;;  %s2772_s17 = sphi %s2812_s17, %s3624_s17   ;;  %s2768_s16 = sphi %s2810_s16, %s3623_s16   ;;  %s2764_s15 = sphi %s2808_s15, %s3622_s15  }
   0x6   : > { %s2833_s21 = sadd.s32 1, %s2776_s18   ;;  %s27_s22 = sadd.s32 1, %s2772_s17 }
   0x7   : > { %s24_s23 = ssub.s32 %s2776_s18, %s2833_s21  ;;  %p34_p0 = scmp.ne.s32.totalorder %s2772_s17, %s2768_s16 }
   0x8   : > { %p25_p1 = scmp.eq.s32.totalorder %s24_s23, 0  ;;  %p35_p2 = scmp.eq.s32.totalorder %s2776_s18, 0 }
   0x9   : > { %p40_p3 = scmp.ne.s32.totalorder %s2768_s16, %s2764_s15  ;;  %p41_p4 = scmp.eq.s32.totalorder %s2829_s19, 0 }
   0xa   : > { %s2845_s24 = scalar_select %p25_p1, %s2772_s17, %s27_s22  }
   0xb   : > { %p2847_p5 = por %p35_p2, %p34_p0  ;;  %p2851_p6 = por %p41_p4, %p40_p3 }
   0xc   : > { %p127_p7 = scmp.eq.s32.totalorder %s2829_s19, 1  ;;  %p133_p8 = scmp.eq.s32.totalorder %s2378_s20, 1 }
   0xd   : > { %s3612_s26 = scalar_select %p2851_p6, 1, 0 }
   0xe   : > { %p2615_p10 = scmp.lt.s32.totalorder %s2776_s18, 2  ;;  %p2858_p11 = por %p127_p7, %p34_p0 }
   0xf   : > { %p2862_p12 = por %p133_p8, %p40_p3  ;;  %s162_s29 = sand.u32 1, %s2772_s17  }
  0x10   : > { %s3613_s27 = scalar_select %p2858_p11, 1, 0 }
  0x11   : > { %s3614_s28 = scalar_select %p2862_p12, 1, 0 }
  0x12   : > { %s2382_s30 = sshll.u32 %s2776_s18, 7  ;;  %s2381_s5 = sshll.u32 %s162_s29, 3 }
  0x13   : > { %s2871_s8 = scalar_lea.hbm %s3604_s0, %s2382_s30  ;;  %s166_s9 = scalar_lea.vmem [#allocation3], %s2381_s5 }
  0x14   : > { %s173_s10 = sshll.u32 %s166_s9, 4  ;;  %p2875_p13 = pnand %p2615_p10, %p2847_p5  ;;  %s2879_s10 = int_to_ptr.vmem [resolvable:$true] %s173_s10 }
  0x15   : > { %s163_s12 = scalar_lea.sflag [#allocation4], %s162_s29  ;;  %s2684_s13 = scalar_lea.hbm %s2871_s8, 128 }
  0x16   : > { %p2685_p2 = scmp.ne.s32.totalorder %s2871_s8, %s2684_s13  ;;  %p2686_p3 = pneg %p2875_p13 }
  0x17   : > { %s2689_s22 = scalar_lea.hbm %s3604_s0, 256  ;;  %p2690_p5 = scmp.lt.s32.totalorder %s2871_s8, %s3604_s0 }
  0x18   : > { %p2687_p4 = pnand %p2686_p3, %p2685_p2  ;;  %p2691_p8 = scmp.lt.s32.totalorder %s2689_s22, %s2684_s13 }
  0x1a   : > { %p2688_p7 = pneg %p2687_p4  ;;  %p2692_p10 = por %p2691_p8, %p2690_p5 }
  0x1c   : > { %p2693_p9 = pnand %p2692_p10, %p2688_p7 }
  0x1e   : > { %2696 = shalt.err (!%p2693_p9)
}
  0x1f   : > { %s2697_s29 = scalar_lea.vmem %s2879_s10, 128  ;;  %s2778_s30 = smov [#allocation3]  }
  0x20   : > { %p2698_p0 = scmp.ne.s32.totalorder %s2879_s10, %s2697_s29  ;;  %s2702_s5 = sshll.u32 %s2778_s30, 4  ;;  %s2703_s5 = int_to_ptr.vmem [resolvable:$false] %s2702_s5 }
  0x21   : > { %s2704_s6 = scalar_lea.vmem %s2703_s5, 256  ;;  %p2705_p4 = scmp.lt.s32.totalorder %s2879_s10, %s2703_s5 }
  0x22   : > { %p2700_p1 = pnand %p2698_p0, %p2686_p3  ;;  %p2706_p12 = scmp.lt.s32.totalorder %s2704_s6, %s2697_s29 }
  0x24   : > { %p2701_p2 = pneg %p2700_p1  ;;  %p2707_p11 = por %p2706_p12, %p2705_p4 }
  0x26   : > { %p2708_p6 = pnand %p2707_p11, %p2701_p2 }
  0x28   : > { %2711 = shalt.err (!%p2708_p6)
}
  0x29   : > { %2610 = dma.hbm_to_vmem [thread:$0]  (!%p2875_p13), %s2871_s8, 128, %s2879_s10, %s163_s12  }
  0x2a   : > { %p3616_p9 = scmp.lt.s32.totalorder %s2776_s18, 3  ;;  %p3617_p7 = scmp.ge.s32.totalorder %s2776_s18, 1 }
  0x2c   : > { %p179_p0 = pnand %p3617_p7, %p3616_p9 }
  0x2d   : > { %s2906_s7 = sand.u32 (!%p179_p0), 1, %s2768_s16   ;;  %p3618_p6 = scmp.ne.s32.totalorder (!%p179_p0), %s3612_s26, 0 }
  0x2e   : > { %182 = sbr.rel (%p179_p0) target bundleno = 1463 (0x5b7), region = 36  ;;  %s2384_s9 = sshll.u32 (!%p179_p0), %s2906_s7, 3 }
  0x2f   : > { %s185_s13 = scalar_lea.sflag (!%p179_p0), [#allocation4], %s2906_s7  ;;  %s2912_s11 = scalar_lea.vmem (!%p179_p0), [#allocation3], %s2384_s9 }
  0x33   : > { %2755 = dma.done.wait (%p3618_p6), %s185_s13, 128  }
  0x34   : > { %2757 = vsyncadd (%p3618_p6), %s185_s13, 4294967168  ;;  %v2779_v0 = vmov 0.0   ;;  %v299_v1 = vld [vmem:[%s3605_s1 + $0x2a8] sm:$0xff]  ;;  %v298_v2 = vld [vmem:[%s3605_s1 + $0x2a0] sm:$0xff]  ;;  %vm310_vm0 = vcmask 523264   ;;  %vm2780_vm1 = vmmov 0  }
  0x35   : > { %378 = vmatprep.mubr.f32.mxu0 %v2779_v0  ;;  %449 = vmatprep.mubr.f32.mxu1 %v2779_v0  ;;  %v287_v3 = vld [vmem:[%s3605_s1 + $0x248] sm:$0xff]  ;;  %v286_v4 = vld [vmem:[%s3605_s1 + $0x240] sm:$0xff]  ;;  %v301_v8 = vld [vmem:[%s3605_s1 + $0x2b8] sm:$0xff]  ;;  %s2781_s13 = smov 64   ;;  %vm817_vm2 = vcmask 64512   ;;  %vm1074_vm3 = vcmask 1048064  }
  0x36   : > { %330 = vmatprep.subr.mxu0 %v299_v1  ;;  %v275_v5 = vld [vmem:[%s3605_s1 + $0x1e8] sm:$0xff]  ;;  %v274_v6 = vld [vmem:[%s3605_s1 + $0x1e0] sm:$0xff]  ;;  %401 = vmatprep.subr.mxu1 %v301_v8  ;;  %v300_v10 = vld [vmem:[%s3605_s1 + $0x2b0] sm:$0xff]  ;;  %s212_s23 = scalar_lea.vmem [#allocation6], %s2384_s9  ;;  %s2295_s6 = scalar_lea.sflag [#allocation5], %s2906_s7 }
  0x37   : > { %331 = vmatpush1.msra.mxu0 %v298_v2  ;;  %v263_v7 = vld [vmem:[%s3605_s1 + $0x188] sm:$0xff]  ;;  %v262_v9 = vld [vmem:[%s3605_s1 + $0x180] sm:$0xff]  ;;  %402 = vmatpush1.msra.mxu1 %v300_v10  ;;  %v289_v12 = vld [vmem:[%s3605_s1 + $0x258] sm:$0xff]  ;;  %s2308_s25 = sshll.u32 %s212_s23, 4  ;;  %p3619_p12 = scmp.ne.s32.totalorder %s3613_s27, 0  ;;  %s2309_s25 = int_to_ptr.vmem [resolvable:$true] %s2308_s25 }
  0x38   : > { %332 = vmatprep.subr.mxu0 %v287_v3  ;;  %v251_v11 = vld [vmem:[%s3605_s1 + $0x128] sm:$0xff]  ;;  %v288_v13 = vld [vmem:[%s3605_s1 + $0x250] sm:$0xff]  ;;  %v250_v14 = vld [vmem:[%s3605_s1 + $0x120] sm:$0xff]  ;;  %403 = vmatprep.subr.mxu1 %v289_v12  ;;  %s2712_s8 = scalar_lea.vmem %s2309_s25, 128 }
  0x39   : > { %333 = vmatpush1.msra.mxu0 %v286_v4  ;;  %v277_v15 = vld [vmem:[%s3605_s1 + $0x1f8] sm:$0xff]  ;;  %v239_v16 = vld [vmem:[%s3605_s1 + $0xc8] sm:$0xff]  ;;  %404 = vmatpush1.msra.mxu1 %v288_v13  ;;  %v276_v17 = vld [vmem:[%s3605_s1 + $0x1f0] sm:$0xff]  ;;  %p2713_p11 = scmp.ne.s32.totalorder %s2309_s25, %s2712_s8 }
  0x3a   : > { %334 = vmatprep.subr.mxu0 %v275_v5  ;;  %v265_v18 = vld [vmem:[%s3605_s1 + $0x198] sm:$0xff]  ;;  %v238_v19 = vld [vmem:[%s3605_s1 + $0xc0] sm:$0xff]  ;;  %405 = vmatprep.subr.mxu1 %v277_v15  ;;  %v264_v20 = vld [vmem:[%s3605_s1 + $0x190] sm:$0xff] }
  0x3b   : > { %335 = vmatpush1.msra.mxu0 %v274_v6  ;;  %v227_v21 = vld [vmem:[%s3605_s1 + $0x68] sm:$0xff]  ;;  %406 = vmatpush1.msra.mxu1 %v276_v17  ;;  %v253_v22 = vld [vmem:[%s3605_s1 + $0x138] sm:$0xff]  ;;  %v226_v23 = vld [vmem:[%s3605_s1 + $0x60] sm:$0xff]  ;;  %p2714_p13 = pnand %p2713_p11, %p3619_p12 }
  0x3c   : > { %336 = vmatprep.subr.mxu0 %v263_v7  ;;  %407 = vmatprep.subr.mxu1 %v265_v18  ;;  %v252_v24 = vld [vmem:[%s3605_s1 + $0x130] sm:$0xff]  ;;  %v215_v25 = vld [vmem:[%s3605_s1 + $0x8] sm:$0xff]  ;;  %v241_v26 = vld [vmem:[%s3605_s1 + $0xd8] sm:$0xff] }
  0x3d   : > { %337 = vmatpush1.msra.mxu0 %v262_v9  ;;  %408 = vmatpush1.msra.mxu1 %v264_v20  ;;  %v214_v27 = vld [vmem:[%s3605_s1] sm:$0xff]  ;;  %v240_v28 = vld [vmem:[%s3605_s1 + $0xd0] sm:$0xff]  ;;  %v303_v30 = vld [vmem:[%s3605_s1 + $0x2c8] sm:$0xff]  ;;  %p2715_p1 = pneg %p2714_p13 }
  0x3e   : > { %338 = vmatprep.subr.mxu0 %v251_v11  ;;  %409 = vmatprep.subr.mxu1 %v253_v22  ;;  %v3005_v29 = vld [vmem:[%s2912_s11] sm:$0xff]  ;;  %v229_v32 = vld [vmem:[%s3605_s1 + $0x78] sm:$0xff]  ;;  %v228_v34 = vld [vmem:[%s3605_s1 + $0x70] sm:$0xff]  ;;  %s2418_s11 = sshll.u32 %s2829_s19, 7  ;;  %s2782_s19 = smov [#allocation6]  }
  0x3f   : > { %339 = vmatpush1.msra.mxu0 %v250_v14  ;;  %410 = vmatpush1.msra.mxu1 %v252_v24  ;;  %v302_v31 = vld [vmem:[%s3605_s1 + $0x2c0] sm:$0xff]  ;;  %v291_v33 = vld [vmem:[%s3605_s1 + $0x268] sm:$0xff]  ;;  %v217_v36 = vld [vmem:[%s3605_s1 + $0x18] sm:$0xff]  ;;  %s2306_s5 = scalar_lea.hbm %s3608_s4, %s2418_s11  ;;  %s2716_s10 = sshll.u32 %s2782_s19, 4  ;;  %s2717_s10 = int_to_ptr.vmem [resolvable:$false] %s2716_s10 }
  0x40   : > { %340 = vmatprep.subr.mxu0 %v239_v16  ;;  %411 = vmatprep.subr.mxu1 %v241_v26  ;;  %v290_v35 = vld [vmem:[%s3605_s1 + $0x260] sm:$0xff]  ;;  %v279_v37 = vld [vmem:[%s3605_s1 + $0x208] sm:$0xff]  ;;  %v216_v38 = vld [vmem:[%s3605_s1 + $0x10] sm:$0xff]  ;;  %s2718_s9 = scalar_lea.vmem %s2717_s10, 256  ;;  %p2719_p3 = scmp.lt.s32.totalorder %s2309_s25, %s2717_s10 }
  0x41   : > { %341 = vmatpush1.msra.mxu0 %v238_v19  ;;  %412 = vmatpush1.msra.mxu1 %v240_v28  ;;  %v278_v39 = vld [vmem:[%s3605_s1 + $0x200] sm:$0xff]  ;;  %v305_v40 = vld [vmem:[%s3605_s1 + $0x2d8] sm:$0xff]  ;;  %v267_v41 = vld [vmem:[%s3605_s1 + $0x1a8] sm:$0xff]  ;;  %p2720_p5 = scmp.lt.s32.totalorder %s2718_s9, %s2712_s8 }
  0x42   : > { %342 = vmatprep.subr.mxu0 %v227_v21  ;;  %413 = vmatprep.subr.mxu1 %v229_v32  ;;  %v266_v42 = vld [vmem:[%s3605_s1 + $0x1a0] sm:$0xff]  ;;  %v304_v43 = vld [vmem:[%s3605_s1 + $0x2d0] sm:$0xff]  ;;  %v255_v44 = vld [vmem:[%s3605_s1 + $0x148] sm:$0xff] }
  0x43   : > { %343 = vmatpush1.msra.mxu0 %v226_v23  ;;  %414 = vmatpush1.msra.mxu1 %v228_v34  ;;  %v254_v45 = vld [vmem:[%s3605_s1 + $0x140] sm:$0xff]  ;;  %v293_v46 = vld [vmem:[%s3605_s1 + $0x278] sm:$0xff]  ;;  %v243_v47 = vld [vmem:[%s3605_s1 + $0xe8] sm:$0xff]  ;;  %p2721_p8 = por %p2720_p5, %p2719_p3 }
  0x44   : > { %344 = vmatprep.subr.mxu0 %v215_v25  ;;  %415 = vmatprep.subr.mxu1 %v217_v36  ;;  %v292_v48 = vld [vmem:[%s3605_s1 + $0x270] sm:$0xff]  ;;  %v242_v49 = vld [vmem:[%s3605_s1 + $0xe0] sm:$0xff]  ;;  %v281_v50 = vld [vmem:[%s3605_s1 + $0x218] sm:$0xff] }
  0x45   : > { %345 = vmatpush1.msra.mxu0 %v214_v27  ;;  %416 = vmatpush1.msra.mxu1 %v216_v38  ;;  %v231_v51 = vld [vmem:[%s3605_s1 + $0x88] sm:$0xff]  ;;  %v280_v52 = vld [vmem:[%s3605_s1 + $0x210] sm:$0xff]  ;;  %v230_v53 = vld [vmem:[%s3605_s1 + $0x80] sm:$0xff]  ;;  %p2722_p10 = pnand %p2721_p8, %p2715_p1 }
  0x46   : > { %2386 = vmatmul.mubr.msk.f32.vlgmr.msra.gmra.mxu0 %vm310_vm0, %v3005_v29  ;;  %472 = vmatprep.subr.mxu0 %v303_v30  ;;  %v269_v54 = vld [vmem:[%s3605_s1 + $0x1b8] sm:$0xff]  ;;  %v219_v55 = vld [vmem:[%s3605_s1 + $0x28] sm:$0xff]  ;;  %v268_v56 = vld [vmem:[%s3605_s1 + $0x1b0] sm:$0xff] }
  0x47   : > { %473 = vmatpush1.msra.mxu0 %v302_v31  ;;  %543 = vmatprep.subr.mxu1 %v305_v40  ;;  %v218_v57 = vld [vmem:[%s3605_s1 + $0x20] sm:$0xff]  ;;  %v257_v58 = vld [vmem:[%s3605_s1 + $0x158] sm:$0xff]  ;;  %v256_v59 = vld [vmem:[%s3605_s1 + $0x150] sm:$0xff] }
  0x48   : > { %474 = vmatprep.subr.mxu0 %v291_v33  ;;  %2387 = vmatmul.mubr.msk.f32.vlgmr.msra.gmra.mxu1 %vm310_vm0, %v3005_v29  ;;  %v245_v60 = vld [vmem:[%s3605_s1 + $0xf8] sm:$0xff]  ;;  %v244_v61 = vld [vmem:[%s3605_s1 + $0xf0] sm:$0xff]  ;;  %v307_v3 = vld [vmem:[%s3605_s1 + $0x2e8] sm:$0xff] }
  0x49   : > { %475 = vmatpush1.msra.mxu0 %v290_v35  ;;  %544 = vmatpush1.msra.mxu1 %v304_v43  ;;  %v233_v62 = vld [vmem:[%s3605_s1 + $0x98] sm:$0xff]  ;;  %v232_v63 = vld [vmem:[%s3605_s1 + $0x90] sm:$0xff]  ;;  %v306_v4 = vld [vmem:[%s3605_s1 + $0x2e0] sm:$0xff] }
  0x4a   : > { %476 = vmatprep.subr.mxu0 %v279_v37  ;;  %520 = vmatprep.mubr.f32.mxu0 %v2779_v0  ;;  %v221_v1 = vld [vmem:[%s3605_s1 + $0x38] sm:$0xff]  ;;  %v220_v2 = vld [vmem:[%s3605_s1 + $0x30] sm:$0xff]  ;;  %v295_v5 = vld [vmem:[%s3605_s1 + $0x288] sm:$0xff] }
  0x4b   : > { %477 = vmatpush1.msra.mxu0 %v278_v39  ;;  %545 = vmatprep.subr.mxu1 %v293_v46  ;;  %v294_v6 = vld [vmem:[%s3605_s1 + $0x280] sm:$0xff]  ;;  %v283_v7 = vld [vmem:[%s3605_s1 + $0x228] sm:$0xff]  ;;  %v309_v27 = vld [vmem:[%s3605_s1 + $0x2f8] sm:$0xff] }
  0x4c   : > { %478 = vmatprep.subr.mxu0 %v267_v41  ;;  %546 = vmatpush1.msra.mxu1 %v292_v48  ;;  %v282_v8 = vld [vmem:[%s3605_s1 + $0x220] sm:$0xff]  ;;  %v271_v9 = vld [vmem:[%s3605_s1 + $0x1c8] sm:$0xff]  ;;  %v308_v28 = vld [vmem:[%s3605_s1 + $0x2f0] sm:$0xff] }
  0x4d   : > { %479 = vmatpush1.msra.mxu0 %v266_v42  ;;  %547 = vmatprep.subr.mxu1 %v281_v50  ;;  %v270_v10 = vld [vmem:[%s3605_s1 + $0x1c0] sm:$0xff]  ;;  %v259_v11 = vld [vmem:[%s3605_s1 + $0x168] sm:$0xff]  ;;  %v297_v30 = vld [vmem:[%s3605_s1 + $0x298] sm:$0xff] }
  0x4e   : > { %480 = vmatprep.subr.mxu0 %v255_v44  ;;  %548 = vmatpush1.msra.mxu1 %v280_v52  ;;  %v258_v12 = vld [vmem:[%s3605_s1 + $0x160] sm:$0xff]  ;;  %v247_v13 = vld [vmem:[%s3605_s1 + $0x108] sm:$0xff]  ;;  %v296_v31 = vld [vmem:[%s3605_s1 + $0x290] sm:$0xff] }
  0x4f   : > { %481 = vmatpush1.msra.mxu0 %v254_v45  ;;  %549 = vmatprep.subr.mxu1 %v269_v54  ;;  %v246_v14 = vld [vmem:[%s3605_s1 + $0x100] sm:$0xff]  ;;  %v235_v15 = vld [vmem:[%s3605_s1 + $0xa8] sm:$0xff]  ;;  %v285_v32 = vld [vmem:[%s3605_s1 + $0x238] sm:$0xff] }
  0x50   : > { %482 = vmatprep.subr.mxu0 %v243_v47  ;;  %550 = vmatpush1.msra.mxu1 %v268_v56  ;;  %v234_v16 = vld [vmem:[%s3605_s1 + $0xa0] sm:$0xff]  ;;  %v223_v17 = vld [vmem:[%s3605_s1 + $0x48] sm:$0xff]  ;;  %v284_v33 = vld [vmem:[%s3605_s1 + $0x230] sm:$0xff] }
  0x51   : > { %483 = vmatpush1.msra.mxu0 %v242_v49  ;;  %551 = vmatprep.subr.mxu1 %v257_v58  ;;  %v222_v18 = vld [vmem:[%s3605_s1 + $0x40] sm:$0xff]  ;;  %v273_v34 = vld [vmem:[%s3605_s1 + $0x1d8] sm:$0xff]  ;;  %v272_v35 = vld [vmem:[%s3605_s1 + $0x1d0] sm:$0xff] }
  0x52   : > { %484 = vmatprep.subr.mxu0 %v231_v51  ;;  %552 = vmatpush1.msra.mxu1 %v256_v59  ;;  %v261_v36 = vld [vmem:[%s3605_s1 + $0x178] sm:$0xff]  ;;  %v260_v37 = vld [vmem:[%s3605_s1 + $0x170] sm:$0xff] }
  0x53   : > { %485 = vmatpush1.msra.mxu0 %v230_v53  ;;  %553 = vmatprep.subr.mxu1 %v245_v60  ;;  %v249_v38 = vld [vmem:[%s3605_s1 + $0x118] sm:$0xff]  ;;  %v248_v39 = vld [vmem:[%s3605_s1 + $0x110] sm:$0xff] }
  0x54   : > { %486 = vmatprep.subr.mxu0 %v219_v55  ;;  %591 = vmatprep.mubr.f32.mxu1 %v2779_v0  ;;  %v237_v40 = vld [vmem:[%s3605_s1 + $0xb8] sm:$0xff]  ;;  %v236_v41 = vld [vmem:[%s3605_s1 + $0xb0] sm:$0xff] }
  0x55   : > { %487 = vmatpush1.msra.mxu0 %v218_v57  ;;  %554 = vmatpush1.msra.mxu1 %v244_v61  ;;  %v225_v42 = vld [vmem:[%s3605_s1 + $0x58] sm:$0xff]  ;;  %v224_v43 = vld [vmem:[%s3605_s1 + $0x50] sm:$0xff] }
  0x56   : > { %2388 = vmatmul.mubr.msk.f32.vlgmr.msra.gmra.mxu0 %vm310_vm0, %v3005_v29  ;;  %555 = vmatprep.subr.mxu1 %v233_v62 }
  0x57   : > { %662 = vmatprep.mubr.f32.mxu0 %v2779_v0  ;;  %556 = vmatpush1.msra.mxu1 %v232_v63 }
  0x58   : > { %557 = vmatprep.subr.mxu1 %v221_v1  ;;  %614 = vmatprep.subr.mxu0 %v307_v3 }
  0x59   : > { %558 = vmatpush1.msra.mxu1 %v220_v2  ;;  %615 = vmatpush1.msra.mxu0 %v306_v4 }
  0x5a   : > { %2389 = vmatmul.mubr.msk.f32.vlgmr.msra.gmra.mxu1 %vm310_vm0, %v3005_v29  ;;  %616 = vmatprep.subr.mxu0 %v295_v5 }
  0x5b   : > { %733 = vmatprep.mubr.f32.mxu1 %v2779_v0  ;;  %617 = vmatpush1.msra.mxu0 %v294_v6 }
  0x5c   : > { %618 = vmatprep.subr.mxu0 %v283_v7  ;;  %685 = vmatprep.subr.mxu1 %v309_v27 }
  0x5d   : > { %619 = vmatpush1.msra.mxu0 %v282_v8  ;;  %686 = vmatpush1.msra.mxu1 %v308_v28 }
  0x5e   : > { %620 = vmatprep.subr.mxu0 %v271_v9  ;;  %687 = vmatprep.subr.mxu1 %v297_v30 }
  0x5f   : > { %621 = vmatpush1.msra.mxu0 %v270_v10  ;;  %688 = vmatpush1.msra.mxu1 %v296_v31 }
  0x60   : > { %622 = vmatprep.subr.mxu0 %v259_v11  ;;  %689 = vmatprep.subr.mxu1 %v285_v32 }
  0x61   : > { %623 = vmatpush1.msra.mxu0 %v258_v12  ;;  %690 = vmatpush1.msra.mxu1 %v284_v33 }
  0x62   : > { %624 = vmatprep.subr.mxu0 %v247_v13  ;;  %691 = vmatprep.subr.mxu1 %v273_v34 }
  0x63   : > { %625 = vmatpush1.msra.mxu0 %v246_v14  ;;  %692 = vmatpush1.msra.mxu1 %v272_v35 }
  0x64   : > { %626 = vmatprep.subr.mxu0 %v235_v15  ;;  %693 = vmatprep.subr.mxu1 %v261_v36 }
  0x65   : > { %627 = vmatpush1.msra.mxu0 %v234_v16  ;;  %694 = vmatpush1.msra.mxu1 %v260_v37 }
  0x66   : > { %628 = vmatprep.subr.mxu0 %v223_v17  ;;  %695 = vmatprep.subr.mxu1 %v249_v38 }
  0x67   : > { %629 = vmatpush1.msra.mxu0 %v222_v18  ;;  %696 = vmatpush1.msra.mxu1 %v248_v39 }
  0x68   : > { %2390 = vmatmul.mubr.msk.f32.vlgmr.msra.gmra.mxu0 %vm310_vm0, %v3005_v29  ;;  %2523 = vmatprep.subr.mxu0 %v2779_v0 }
  0x69   : > { %2525 = vmatprep.mubr.msk.f32.mxu0 %vm2780_vm1, %v2779_v0  ;;  %697 = vmatprep.subr.mxu1 %v237_v40 }
  0x6a   : > { %698 = vmatpush1.msra.mxu1 %v236_v41 }
  0x6b   : > { %699 = vmatprep.subr.mxu1 %v225_v42 }
  0x6c   : > { %700 = vmatpush1.msra.mxu1 %v224_v43 }
  0x6d   : > { %2528 = vmatprep.subr.mxu1 %v2779_v0  ;;  %2391 = vmatmul.mubr.msk.f32.vlgmr.msra.gmra.mxu1 %vm310_vm0, %v3005_v29 }
  0x6e   : > { %2530 = vmatprep.mubr.msk.f32.mxu1 %vm2780_vm1, %v2779_v0 }
 0x106   : > { %v380_v19 = vpop.f32.mrf.mxu0 }
 0x108   : > { %v3180_v20 = vpop.f32.mrf.mxu0  ;;  %v3182_v22 = vpop.f32.mrf.mxu1 }
 0x10a   : > { %v3189_v24 = vpop.f32.mrf.mxu1 }
 0x116   : > { %v522_v21 = vpop.f32.mrf.mxu0 }
 0x117   : > { %905 = vrot.lane.b32.xlu0 %v522_v21, %s2781_s13  ;;  %2524 = vmatpush3.xpose.msk.msra.mxu0 %vm310_vm0, %v522_v21 }
 0x118   : > { %v524_v23 = vpop.f32.mrf.mxu0  ;;  %2533 = vmatprep.subr.mxu0 %v2779_v0 }
 0x119   : > { %1240 = vrot.lane.b32.xlu1 %v524_v23, %s2781_s13 }
 0x11a   : > { %2526 = vmatmul.mubr.msk.f32.vlgmr.msra.gmra.mxu0 %vm310_vm0, %v380_v19  ;;  %v593_v25 = vpop.f32.mrf.mxu1 }
 0x11b   : > { %903 = vrot.lane.b32.xlu0 %v380_v19, %s2781_s13  ;;  %2535 = vmatprep.mubr.msk.f32.mxu0 %vm2780_vm1, %v2779_v0 }
 0x11c   : > { %v3197_v26 = vpop.f32.mrf.mxu1 }
 0x11d   : > { %1238 = vrot.lane.b32.xlu1 %v3180_v20, %s2781_s13 }
 0x11f   : > { %1574 = vrot.lane.b32.xlu0 %v593_v25, %s2781_s13 }
 0x121   : > { %1572 = vrot.lane.b32.xlu1 %v3182_v22, %s2781_s13 }
 0x123   : > { %1908 = vrot.lane.b32.xlu0 %v3197_v26, %s2781_s13 }
 0x125   : > { %1906 = vrot.lane.b32.xlu1 %v3189_v24, %s2781_s13 }
 0x128   : > { %v3253_v44 = vpop.f32.mrf.mxu0 }
 0x129   : > { %2529 = vmatpush3.msra.mxu1 %v3253_v44 }
 0x12a   : > { %2538 = vmatprep.subr.mxu1 %v2779_v0  ;;  %v3298_v52 = vpop.f32.mrf.mxu0 }
 0x189   : > { %v906_v45 = vpop.permute.xlu0 %905 }
 0x18a   : > { %2534 = vmatpush3.xpose.msk.msra.mxu0 %vm310_vm0, %v906_v45 }
 0x18b   : > { %2543 = vmatprep.subr.mxu0 %v2779_v0  ;;  %v1241_v47 = vpop.permute.xlu1 %1240 }
 0x18d   : > { %v904_v46 = vpop.permute.xlu0 %903 }
 0x18e   : > { %2536 = vmatmul.mubr.msk.f32.vlgmr.msra.gmra.mxu0 %vm310_vm0, %v904_v46 }
 0x18f   : > { %2544 = vmatpush3.xpose.msk.msra.mxu0 %vm310_vm0, %v524_v23  ;;  %2545 = vmatprep.mubr.msk.f32.mxu0 %vm2780_vm1, %v2779_v0  ;;  %v1239_v29 = vpop.permute.xlu1 %1238 }
 0x190   : > { %2553 = vmatprep.subr.mxu0 %v2779_v0 }
 0x191   : > { %v1575_v48 = vpop.permute.xlu0 %1574 }
 0x192   : > { %2546 = vmatmul.mubr.msk.f32.vlgmr.msra.gmra.mxu0 %vm310_vm0, %v3180_v20 }
 0x193   : > { %2554 = vmatpush3.xpose.msk.msra.mxu0 %vm310_vm0, %v1241_v47  ;;  %2555 = vmatprep.mubr.msk.f32.mxu0 %vm2780_vm1, %v2779_v0  ;;  %v1573_v49 = vpop.permute.xlu1 %1572 }
 0x194   : > { %2563 = vmatprep.subr.mxu0 %v2779_v0 }
 0x195   : > { %v1909_v50 = vpop.permute.xlu0 %1908 }
 0x196   : > { %2556 = vmatmul.mubr.msk.f32.vlgmr.msra.gmra.mxu0 %vm310_vm0, %v1239_v29 }
 0x197   : > { %2564 = vmatpush3.xpose.msk.msra.mxu0 %vm310_vm0, %v593_v25  ;;  %2565 = vmatprep.mubr.msk.f32.mxu0 %vm2780_vm1, %v2779_v0  ;;  %v1907_v51 = vpop.permute.xlu1 %1906 }
 0x198   : > { %2573 = vmatprep.subr.mxu0 %v2779_v0 }
 0x19a   : > { %2566 = vmatmul.mubr.msk.f32.vlgmr.msra.gmra.mxu0 %vm310_vm0, %v3182_v22 }
 0x19b   : > { %2574 = vmatpush3.xpose.msk.msra.mxu0 %vm310_vm0, %v1575_v48  ;;  %2575 = vmatprep.mubr.msk.f32.mxu0 %vm2780_vm1, %v2779_v0 }
 0x19c   : > { %2583 = vmatprep.subr.mxu0 %v2779_v0 }
 0x19e   : > { %2576 = vmatmul.mubr.msk.f32.vlgmr.msra.gmra.mxu0 %vm310_vm0, %v1573_v49 }
 0x19f   : > { %2584 = vmatpush3.xpose.msk.msra.mxu0 %vm310_vm0, %v3197_v26  ;;  %2585 = vmatprep.mubr.msk.f32.mxu0 %vm2780_vm1, %v2779_v0 }
 0x1a0   : > { %2593 = vmatprep.subr.mxu0 %v2779_v0 }
 0x1a2   : > { %2586 = vmatmul.mubr.msk.f32.vlgmr.msra.gmra.mxu0 %vm310_vm0, %v3189_v24 }
 0x1a3   : > { %2594 = vmatpush3.xpose.msk.msra.mxu0 %vm310_vm0, %v1909_v50  ;;  %2595 = vmatprep.mubr.msk.f32.mxu0 %vm2780_vm1, %v2779_v0 }
 0x1a6   : > { %2596 = vmatmul.mubr.msk.f32.vlgmr.msra.gmra.mxu0 %vm310_vm0, %v1907_v51 }
 0x1da   : > { %v812_v53 = vpop.f32.mrf.mxu0 }
 0x1db   : > { %v816_v54 = vmul.f32 0.125, %v812_v53 }
 0x1dc   : > { %v2527_v55 = vpop.f32.mrf.mxu0 }
 0x1dd   : > { %v818_v56 = vsel %vm817_vm2, %v816_v54, -inf }
 0x1de   : > { %819 = vmax.xlane.f32.xlu0 %v818_v56 }
 0x24e   : > { %v977_v57 = vpop.f32.mrf.mxu0 }
 0x24f   : > { %v981_v58 = vmul.f32 0.125, %v977_v57 }
 0x250   : > { %v2537_v59 = vpop.f32.mrf.mxu0 }
 0x251   : > { %v982_v60 = vsel %vm817_vm2, %v981_v58, -inf }
 0x252   : > { %983 = vmax.xlane.f32.xlu1 %v982_v60  ;;  %v1148_v61 = vpop.f32.mrf.mxu0 }
 0x253   : > { %v1152_v62 = vmul.f32 0.125, %v1148_v61 }
 0x254   : > { %v2547_v63 = vpop.f32.mrf.mxu0 }
 0x255   : > { %v1153_v1 = vsel %vm817_vm2, %v1152_v62, -inf  ;;  %v735_v63 = vpop.f32.mrf.mxu1 }
 0x256   : > { %1154 = vmax.xlane.f32.xlu0 %v1153_v1  ;;  %v1312_v2 = vpop.f32.mrf.mxu0 }
 0x257   : > { %v1316_v3 = vmul.f32 0.125, %v1312_v2  ;;  %v737_v1 = vpop.f32.mrf.mxu1 }
 0x258   : > { %v2557_v4 = vpop.f32.mrf.mxu0 }
 0x259   : > { %v1317_v5 = vsel %vm817_vm2, %v1316_v3, -inf }
 0x25a   : > { %1318 = vmax.xlane.f32.xlu0 %v1317_v5  ;;  %v1482_v6 = vpop.f32.mrf.mxu0 }
 0x25b   : > { %v1486_v7 = vmul.f32 0.125, %v1482_v6 }
 0x25c   : > { %v2567_v8 = vpop.f32.mrf.mxu0 }
 0x25d   : > { %v1487_v9 = vsel %vm817_vm2, %v1486_v7, -inf }
 0x25e   : > { %1488 = vmax.xlane.f32.xlu1 %v1487_v9  ;;  %v1646_v10 = vpop.f32.mrf.mxu0 }
 0x25f   : > { %v1650_v11 = vmul.f32 0.125, %v1646_v10 }
 0x260   : > { %v2577_v12 = vpop.f32.mrf.mxu0 }
 0x261   : > { %v1651_v13 = vsel %vm817_vm2, %v1650_v11, -inf }
 0x262   : > { %1652 = vmax.xlane.f32.xlu0 %v1651_v13  ;;  %v1816_v14 = vpop.f32.mrf.mxu0 }
 0x263   : > { %v1820_v15 = vmul.f32 0.125, %v1816_v14 }
 0x264   : > { %v2587_v16 = vpop.f32.mrf.mxu0 }
 0x265   : > { %v1821_v17 = vsel %vm817_vm2, %v1820_v15, -inf }
 0x266   : > { %1822 = vmax.xlane.f32.xlu1 %v1821_v17  ;;  %v1980_v18 = vpop.f32.mrf.mxu0 }
 0x267   : > { %v1984_v19 = vmul.f32 0.125, %v1980_v18  ;;  %v820_v22 = vpop.xlane.xlu0 %819 }
 0x268   : > { %v2597_v20 = vpop.f32.mrf.mxu0  ;;  %v821_v23 = vsub.f32 %v816_v54, %v820_v22 }
 0x269   : > { %v1985_v21 = vsel %vm817_vm2, %v1984_v19, -inf }
 0x26a   : > { %1986 = vmax.xlane.f32.xlu0 %v1985_v21  ;;  %v822_v24 = vmul.f32 1.442695, %v821_v23 }
 0x26c   : > { %2652 = vpow2.f32 %v822_v24 }
 0x277   : > { %994 = vrot.lane.b32.xlu1 %v3253_v44, %s2781_s13 }
 0x279   : > { %v2653_v25 = vpop.eup %2652 }
 0x27a   : > { %v824_v26 = vsel %vm817_vm2, %v2653_v25, 0.0 }
 0x29b   : > { %825 = vadd.xlane.f32.xlu1 %v824_v26 }
 0x2db   : > { %v984_v27 = vpop.xlane.xlu1 %983 }
 0x2dc   : > { %v985_v28 = vsub.f32 %v981_v58, %v984_v27 }
 0x2de   : > { %v986_v30 = vmul.f32 1.442695, %v985_v28 }
 0x2df   : > { %v1155_v31 = vpop.xlane.xlu0 %1154 }
 0x2e0   : > { %2654 = vpow2.f32 %v986_v30  ;;  %v1156_v32 = vsub.f32 %v1152_v62, %v1155_v31  ;;  %v2113_v30 = vld [vmem:[%s3606_s2 + $0xf8] sm:$0xff] }
 0x2e1   : > { %v2097_v31 = vld [vmem:[%s3606_s2 + $0x78] sm:$0xff]  ;;  %2453 = vmatprep.subr.mxu0 %v2113_v30  ;;  %v2118_v30 = vld [vmem:[%s3606_s2 + $0x120] sm:$0xff] }
 0x2e2   : > { %v1157_v33 = vmul.f32 1.442695, %v1156_v32  ;;  %v2112_v32 = vld [vmem:[%s3606_s2 + $0xf0] sm:$0xff]  ;;  %2454 = vmatpush3.msra.mxu0 %v2097_v31  ;;  %v2133_v31 = vld [vmem:[%s3606_s2 + $0x198] sm:$0xff] }
 0x2e3   : > { %v1319_v34 = vpop.xlane.xlu0 %1318  ;;  %2455 = vmatprep.subr.mxu0 %v2112_v32  ;;  %v2117_v32 = vld [vmem:[%s3606_s2 + $0x118] sm:$0xff] }
 0x2e4   : > { %2656 = vpow2.f32 %v1157_v33  ;;  %v1320_v35 = vsub.f32 %v1316_v3, %v1319_v34  ;;  %v2111_v33 = vld [vmem:[%s3606_s2 + $0xe8] sm:$0xff] }
 0x2e5   : > { %v2095_v34 = vld [vmem:[%s3606_s2 + $0x68] sm:$0xff] }
 0x2e6   : > { %v1321_v36 = vmul.f32 1.442695, %v1320_v35  ;;  %v2110_v35 = vld [vmem:[%s3606_s2 + $0xe0] sm:$0xff] }
 0x2e7   : > { %v1489_v37 = vpop.xlane.xlu1 %1488 }
 0x2e8   : > { %2658 = vpow2.f32 %v1321_v36  ;;  %v1490_v38 = vsub.f32 %v1486_v7, %v1489_v37  ;;  %v2094_v36 = vld [vmem:[%s3606_s2 + $0x60] sm:$0xff]  ;;  %v2109_v37 = vld [vmem:[%s3606_s2 + $0xd8] sm:$0xff] }
 0x2ea   : > { %v1491_v39 = vmul.f32 1.442695, %v1490_v38  ;;  %v2093_v38 = vld [vmem:[%s3606_s2 + $0x58] sm:$0xff] }
 0x2eb   : > { %v1653_v40 = vpop.xlane.xlu0 %1652 }
 0x2ec   : > { %2660 = vpow2.f32 %v1491_v39  ;;  %v1654_v41 = vsub.f32 %v1650_v11, %v1653_v40 }
 0x2ed   : > { %v2655_v42 = vpop.eup %2654 }
 0x2ee   : > { %v1655_v43 = vmul.f32 1.442695, %v1654_v41  ;;  %v988_v44 = vsel %vm817_vm2, %v2655_v42, 0.0  ;;  %v2108_v41 = vld [vmem:[%s3606_s2 + $0xd0] sm:$0xff] }
 0x2ef   : > { %v1823_v45 = vpop.xlane.xlu1 %1822  ;;  %989 = vadd.xlane.f32.xlu0 %v988_v44  ;;  %v2091_v44 = vld [vmem:[%s3606_s2 + $0x48] sm:$0xff] }
 0x2f0   : > { %2662 = vpow2.f32 %v1655_v43  ;;  %v1824_v46 = vsub.f32 %v1820_v15, %v1823_v45  ;;  %v2107_v43 = vld [vmem:[%s3606_s2 + $0xc8] sm:$0xff]  ;;  %v2106_v45 = vld [vmem:[%s3606_s2 + $0xc0] sm:$0xff] }
 0x2f1   : > { %v2657_v47 = vpop.eup %2656 }
 0x2f2   : > { %v1825_v29 = vmul.f32 1.442695, %v1824_v46  ;;  %v1159_v48 = vsel %vm817_vm2, %v2657_v47, 0.0  ;;  %v2145_v46 = vld [vmem:[%s3606_s2 + $0x1f8] sm:$0xff] }
 0x2f3   : > { %1160 = vadd.xlane.f32.xlu1 %v1159_v48  ;;  %v1987_v49 = vpop.xlane.xlu0 %1986  ;;  %v995_v2 = vpop.permute.xlu1 %994  ;;  %v2144_v48 = vld [vmem:[%s3606_s2 + $0x1f0] sm:$0xff] }
 0x2f4   : > { %2664 = vpow2.f32 %v1825_v29  ;;  %v1988_v50 = vsub.f32 %v1984_v19, %v1987_v49  ;;  %v2129_v29 = vld [vmem:[%s3606_s2 + $0x178] sm:$0xff] }
 0x2f5   : > { %v2659_v51 = vpop.eup %2658  ;;  %v2105_v49 = vld [vmem:[%s3606_s2 + $0xb8] sm:$0xff] }
 0x2f6   : > { %v1989_v53 = vmul.f32 1.442695, %v1988_v50  ;;  %v1323_v54 = vsel %vm817_vm2, %v2659_v51, 0.0  ;;  %v2128_v50 = vld [vmem:[%s3606_s2 + $0x170] sm:$0xff] }
 0x2f7   : > { %1324 = vadd.xlane.f32.xlu0 %v1323_v54  ;;  %v2127_v54 = vld [vmem:[%s3606_s2 + $0x168] sm:$0xff] }
 0x2f8   : > { %2666 = vpow2.f32 %v1989_v53  ;;  %v2143_v53 = vld [vmem:[%s3606_s2 + $0x1e8] sm:$0xff] }
 0x2f9   : > { %v2661_v55 = vpop.eup %2660 }
 0x2fa   : > { %v1493_v56 = vsel %vm817_vm2, %v2661_v55, 0.0 }
 0x2fb   : > { %1494 = vadd.xlane.f32.xlu1 %v1493_v56  ;;  %v2142_v56 = vld [vmem:[%s3606_s2 + $0x1e0] sm:$0xff] }
 0x2fd   : > { %v3315_v57 = vpop.eup %2662 }
 0x2fe   : > { %v1657_v58 = vsel %vm817_vm2, %v3315_v57, 0.0 }
 0x2ff   : > { %1658 = vadd.xlane.f32.xlu0 %v1657_v58  ;;  %v2103_v58 = vld [vmem:[%s3606_s2 + $0xa8] sm:$0xff] }
 0x301   : > { %v3319_v59 = vpop.eup %2664 }
 0x302   : > { %v1827_v60 = vsel %vm817_vm2, %v3319_v59, 0.0 }
 0x303   : > { %1828 = vadd.xlane.f32.xlu1 %v1827_v60  ;;  %v2102_v60 = vld [vmem:[%s3606_s2 + $0xa0] sm:$0xff] }
 0x305   : > { %v3323_v61 = vpop.eup %2666 }
 0x306   : > { %v1991_v62 = vsel %vm817_vm2, %v3323_v61, 0.0 }
 0x307   : > { %1992 = vadd.xlane.f32.xlu0 %v1991_v62  ;;  %v2086_v62 = vld [vmem:[%s3606_s2 + $0x20] sm:$0xff] }
 0x314   : > { %1663 = vrot.lane.b32.xlu1 %v735_v63, %s2781_s13 }
 0x318   : > { %1997 = vrot.lane.b32.xlu1 %v737_v1, %s2781_s13 }
 0x31d   : > { %1329 = vrot.lane.b32.xlu0 %v3298_v52, %s2781_s13 }
 0x324   : > { %v826_v3 = vpop.xlane.xlu1 %825 }
 0x325   : > { %2668 = vrcp.f32 %v826_v3  ;;  %v2141_v3 = vld [vmem:[%s3606_s2 + $0x1d8] sm:$0xff] }
 0x332   : > { %v2669_v4 = vpop.eup %2668 }
 0x333   : > { %v828_v5 = vmul.f32 %v2669_v4, %v2653_v25  ;;  %v2085_v4 = vld [vmem:[%s3606_s2 + $0x18] sm:$0xff] }
 0x335   : > { %2531 = vmatmul.mubr.msk.f32.vlgmr.msra.gmra.mxu1 %vm817_vm2, %v828_v5  ;;  %v2125_v5 = vld [vmem:[%s3606_s2 + $0x158] sm:$0xff] }
 0x336   : > { %2539 = vmatpush3.msra.mxu1 %v995_v2  ;;  %2540 = vmatprep.mubr.msk.f32.mxu1 %vm2780_vm1, %v2779_v0 }
 0x337   : > { %2548 = vmatprep.subr.mxu1 %v2779_v0 }
 0x378   : > { %v990_v6 = vpop.xlane.xlu0 %989 }
 0x379   : > { %2670 = vrcp.f32 %v990_v6  ;;  %v2100_v6 = vld [vmem:[%s3606_s2 + $0x90] sm:$0xff] }
 0x37c   : > { %v1161_v7 = vpop.xlane.xlu1 %1160 }
 0x37d   : > { %2672 = vrcp.f32 %v1161_v7  ;;  %v2140_v7 = vld [vmem:[%s3606_s2 + $0x1d0] sm:$0xff] }
 0x380   : > { %v1325_v8 = vpop.xlane.xlu0 %1324 }
 0x381   : > { %2674 = vrcp.f32 %v1325_v8  ;;  %v2084_v8 = vld [vmem:[%s3606_s2 + $0x10] sm:$0xff] }
 0x384   : > { %v1495_v9 = vpop.xlane.xlu1 %1494 }
 0x385   : > { %2676 = vrcp.f32 %v1495_v9 }
 0x386   : > { %v2671_v10 = vpop.eup %2670 }
 0x387   : > { %v992_v11 = vmul.f32 %v2671_v10, %v2655_v42  ;;  %v2092_v42 = vld [vmem:[%s3606_s2 + $0x50] sm:$0xff] }
 0x388   : > { %v1659_v12 = vpop.xlane.xlu0 %1658  ;;  %v2124_v10 = vld [vmem:[%s3606_s2 + $0x150] sm:$0xff] }
 0x389   : > { %2541 = vmatmul.mubr.msk.f32.vlgmr.msra.gmra.mxu1 %vm817_vm2, %v992_v11  ;;  %2678 = vrcp.f32 %v1659_v12  ;;  %v2099_v11 = vld [vmem:[%s3606_s2 + $0x88] sm:$0xff] }
 0x38a   : > { %v2673_v13 = vpop.eup %2672  ;;  %2549 = vmatpush3.msra.mxu1 %v3298_v52  ;;  %2550 = vmatprep.mubr.msk.f32.mxu1 %vm2780_vm1, %v2779_v0  ;;  %v2139_v12 = vld [vmem:[%s3606_s2 + $0x1c8] sm:$0xff] }
 0x38b   : > { %v1163_v14 = vmul.f32 %v2673_v13, %v2657_v47  ;;  %2558 = vmatprep.subr.mxu1 %v2779_v0  ;;  %v2090_v47 = vld [vmem:[%s3606_s2 + $0x40] sm:$0xff]  ;;  %v2083_v13 = vld [vmem:[%s3606_s2 + $0x8] sm:$0xff] }
 0x38c   : > { %v1829_v15 = vpop.xlane.xlu1 %1828 }
 0x38d   : > { %2551 = vmatmul.mubr.msk.f32.vlgmr.msra.gmra.mxu1 %vm817_vm2, %v1163_v14  ;;  %2680 = vrcp.f32 %v1829_v15  ;;  %v2123_v14 = vld [vmem:[%s3606_s2 + $0x148] sm:$0xff] }
 0x38e   : > { %2560 = vmatprep.mubr.msk.f32.mxu1 %vm2780_vm1, %v2779_v0  ;;  %v2675_v17 = vpop.eup %2674 }
 0x38f   : > { %v1327_v19 = vmul.f32 %v2675_v17, %v2659_v51  ;;  %v2089_v51 = vld [vmem:[%s3606_s2 + $0x38] sm:$0xff]  ;;  %v2138_v17 = vld [vmem:[%s3606_s2 + $0x1c0] sm:$0xff] }
 0x390   : > { %v1993_v16 = vpop.xlane.xlu0 %1992  ;;  %v1664_v22 = vpop.permute.xlu1 %1663 }
 0x391   : > { %2682 = vrcp.f32 %v1993_v16  ;;  %v2098_v16 = vld [vmem:[%s3606_s2 + $0x80] sm:$0xff] }
 0x392   : > { %v2677_v52 = vpop.eup %2676 }
 0x393   : > { %v1497_v20 = vmul.f32 %v2677_v52, %v2661_v55  ;;  %v2104_v55 = vld [vmem:[%s3606_s2 + $0xb0] sm:$0xff]  ;;  %v2137_v52 = vld [vmem:[%s3606_s2 + $0x1b8] sm:$0xff] }
 0x394   : > { %v1330_v18 = vpop.permute.xlu0 %1329  ;;  %v1998_v27 = vpop.permute.xlu1 %1997 }
 0x395   : > { %2559 = vmatpush3.msra.mxu1 %v1330_v18  ;;  %v2082_v18 = vld [vmem:[%s3606_s2] sm:$0xff] }
 0x396   : > { %2561 = vmatmul.mubr.msk.f32.vlgmr.msra.gmra.mxu1 %vm817_vm2, %v1327_v19  ;;  %2568 = vmatprep.subr.mxu1 %v2779_v0  ;;  %v2679_v21 = vpop.eup %2678  ;;  %v2122_v19 = vld [vmem:[%s3606_s2 + $0x140] sm:$0xff] }
 0x397   : > { %2569 = vmatpush3.msra.mxu1 %v735_v63  ;;  %2570 = vmatprep.mubr.msk.f32.mxu1 %vm2780_vm1, %v2779_v0  ;;  %v1661_v23 = vmul.f32 %v2679_v21, %v3315_v57  ;;  %v2088_v57 = vld [vmem:[%s3606_s2 + $0x30] sm:$0xff]  ;;  %v2126_v63 = vld [vmem:[%s3606_s2 + $0x160] sm:$0xff] }
 0x398   : > { %2578 = vmatprep.subr.mxu1 %v2779_v0  ;;  %v2136_v21 = vld [vmem:[%s3606_s2 + $0x1b0] sm:$0xff] }
 0x39a   : > { %2571 = vmatmul.mubr.msk.f32.vlgmr.msra.gmra.mxu1 %vm817_vm2, %v1497_v20  ;;  %v2681_v24 = vpop.eup %2680  ;;  %v2121_v20 = vld [vmem:[%s3606_s2 + $0x138] sm:$0xff] }
 0x39b   : > { %2579 = vmatpush3.msra.mxu1 %v1664_v22  ;;  %2580 = vmatprep.mubr.msk.f32.mxu1 %vm2780_vm1, %v2779_v0  ;;  %v1831_v25 = vmul.f32 %v2681_v24, %v3319_v59  ;;  %v2087_v59 = vld [vmem:[%s3606_s2 + $0x28] sm:$0xff]  ;;  %v2120_v22 = vld [vmem:[%s3606_s2 + $0x130] sm:$0xff] }
 0x39c   : > { %2588 = vmatprep.subr.mxu1 %v2779_v0 }
 0x39e   : > { %2581 = vmatmul.mubr.msk.f32.vlgmr.msra.gmra.mxu1 %vm817_vm2, %v1661_v23  ;;  %v2683_v26 = vpop.eup %2682  ;;  %v2135_v23 = vld [vmem:[%s3606_s2 + $0x1a8] sm:$0xff] }
 0x39f   : > { %2589 = vmatpush3.msra.mxu1 %v737_v1  ;;  %2590 = vmatprep.mubr.msk.f32.mxu1 %vm2780_vm1, %v2779_v0  ;;  %v1995_v28 = vmul.f32 %v2683_v26, %v3323_v61  ;;  %v2101_v1 = vld [vmem:[%s3606_s2 + $0x98] sm:$0xff]  ;;  %v2134_v26 = vld [vmem:[%s3606_s2 + $0x1a0] sm:$0xff] }
 0x3a0   : > { %2598 = vmatprep.subr.mxu1 %v2779_v0 }
 0x3a2   : > { %2591 = vmatmul.mubr.msk.f32.vlgmr.msra.gmra.mxu1 %vm817_vm2, %v1831_v25  ;;  %v2119_v25 = vld [vmem:[%s3606_s2 + $0x128] sm:$0xff] }
 0x3a3   : > { %2599 = vmatpush3.msra.mxu1 %v1998_v27  ;;  %2600 = vmatprep.mubr.msk.f32.mxu1 %vm2780_vm1, %v2779_v0  ;;  %v2096_v0 = vld [vmem:[%s3606_s2 + $0x70] sm:$0xff] }
 0x3a4   : > { %2456 = vmatpush3.msra.mxu0 %v2096_v0  ;;  %2488 = vmatprep.subr.mxu1 %v2145_v46  ;;  %v2132_v0 = vld [vmem:[%s3606_s2 + $0x190] sm:$0xff] }
 0x3a5   : > { %2457 = vmatprep.subr.mxu0 %v2111_v33 }
 0x3a6   : > { %2601 = vmatmul.mubr.msk.f32.vlgmr.msra.gmra.mxu1 %vm817_vm2, %v1995_v28  ;;  %2458 = vmatpush3.msra.mxu0 %v2095_v34  ;;  %v2116_v34 = vld [vmem:[%s3606_s2 + $0x110] sm:$0xff] }
 0x3a7   : > { %2459 = vmatprep.subr.mxu0 %v2110_v35  ;;  %2489 = vmatpush3.msra.mxu1 %v2129_v29  ;;  %v2131_v35 = vld [vmem:[%s3606_s2 + $0x188] sm:$0xff] }
 0x3a8   : > { %2460 = vmatpush3.msra.mxu0 %v2094_v36  ;;  %2490 = vmatprep.subr.mxu1 %v2144_v48 }
 0x3a9   : > { %2461 = vmatprep.subr.mxu0 %v2109_v37  ;;  %2491 = vmatpush3.msra.mxu1 %v2128_v50  ;;  %v2115_v37 = vld [vmem:[%s3606_s2 + $0x108] sm:$0xff] }
 0x3aa   : > { %2462 = vmatpush3.msra.mxu0 %v2093_v38  ;;  %2492 = vmatprep.subr.mxu1 %v2143_v53  ;;  %v2130_v38 = vld [vmem:[%s3606_s2 + $0x180] sm:$0xff] }
 0x3ab   : > { %2463 = vmatprep.subr.mxu0 %v2108_v41  ;;  %2493 = vmatpush3.msra.mxu1 %v2127_v54 }
 0x3ac   : > { %2464 = vmatpush3.msra.mxu0 %v2092_v42  ;;  %2494 = vmatprep.subr.mxu1 %v2142_v56  ;;  %v2416_v56 = vld [vmem:[%s3607_s3] ss:$0 sm:$0xff] }
 0x3ad   : > { %2465 = vmatprep.subr.mxu0 %v2107_v43  ;;  %2495 = vmatpush3.msra.mxu1 %v2126_v63 }
 0x3ae   : > { %2466 = vmatpush3.msra.mxu0 %v2091_v44  ;;  %2496 = vmatprep.subr.mxu1 %v2141_v3 }
 0x3af   : > { %2467 = vmatprep.subr.mxu0 %v2106_v45  ;;  %2497 = vmatpush3.msra.mxu1 %v2125_v5 }
 0x3b0   : > { %2468 = vmatpush3.msra.mxu0 %v2090_v47  ;;  %2498 = vmatprep.subr.mxu1 %v2140_v7 }
 0x3b1   : > { %2469 = vmatprep.subr.mxu0 %v2105_v49  ;;  %2499 = vmatpush3.msra.mxu1 %v2124_v10 }
 0x3b2   : > { %2470 = vmatpush3.msra.mxu0 %v2089_v51  ;;  %2500 = vmatprep.subr.mxu1 %v2139_v12 }
 0x3b3   : > { %2471 = vmatprep.subr.mxu0 %v2104_v55  ;;  %2501 = vmatpush3.msra.mxu1 %v2123_v14 }
 0x3b4   : > { %2472 = vmatpush3.msra.mxu0 %v2088_v57  ;;  %2502 = vmatprep.subr.mxu1 %v2138_v17 }
 0x3b5   : > { %2473 = vmatprep.subr.mxu0 %v2103_v58  ;;  %2503 = vmatpush3.msra.mxu1 %v2122_v19 }
 0x3b6   : > { %2474 = vmatpush3.msra.mxu0 %v2087_v59  ;;  %2504 = vmatprep.subr.mxu1 %v2137_v52 }
 0x3b7   : > { %2475 = vmatprep.subr.mxu0 %v2102_v60  ;;  %2505 = vmatpush3.msra.mxu1 %v2121_v20 }
 0x3b8   : > { %2476 = vmatpush3.msra.mxu0 %v2086_v62  ;;  %2506 = vmatprep.subr.mxu1 %v2136_v21 }
 0x3b9   : > { %2477 = vmatprep.subr.mxu0 %v2101_v1  ;;  %2507 = vmatpush3.msra.mxu1 %v2120_v22 }
 0x3ba   : > { %2478 = vmatpush3.msra.mxu0 %v2085_v4  ;;  %2508 = vmatprep.subr.mxu1 %v2135_v23 }
 0x3bb   : > { %2479 = vmatprep.subr.mxu0 %v2100_v6  ;;  %2509 = vmatpush3.msra.mxu1 %v2119_v25 }
 0x3bc   : > { %2480 = vmatpush3.msra.mxu0 %v2084_v8  ;;  %2510 = vmatprep.subr.mxu1 %v2134_v26 }
 0x3bd   : > { %2481 = vmatprep.subr.mxu0 %v2099_v11  ;;  %2511 = vmatpush3.msra.mxu1 %v2118_v30 }
 0x3be   : > { %2482 = vmatpush3.msra.mxu0 %v2083_v13  ;;  %2512 = vmatprep.subr.mxu1 %v2133_v31 }
 0x3bf   : > { %2483 = vmatprep.subr.mxu0 %v2098_v16  ;;  %2513 = vmatpush3.msra.mxu1 %v2117_v32 }
 0x3c0   : > { %2484 = vmatpush3.msra.mxu0 %v2082_v18  ;;  %2514 = vmatprep.subr.mxu1 %v2132_v0 }
 0x3c1   : > { %2515 = vmatpush3.msra.mxu1 %v2116_v34 }
 0x3c2   : > { %2516 = vmatprep.subr.mxu1 %v2131_v35 }
 0x3c3   : > { %2517 = vmatpush3.msra.mxu1 %v2115_v37 }
 0x3c4   : > { %2518 = vmatprep.subr.mxu1 %v2130_v38 }
 0x3f5   : > { %v898_v39 = vpop.f32.mrf.mxu1 }
 0x3f6   : > { %902 = vst.msk [vmem:[#allocation2] sm:$0xff] %vm310_vm0, %v898_v39 }
 0x3f7   : > { %v2532_v40 = vpop.f32.mrf.mxu1 }
 0x3f8   : > { %v2114_v40 = vld [vmem:[%s3606_s2 + $0x100] sm:$0xff] }
 0x3f9   : > { %2519 = vmatpush3.msra.mxu1 %v2114_v40 }
 0x449   : > { %v1066_v61 = vpop.f32.mrf.mxu1 }
 0x44a   : > { %1071 = vrot.lane.b32.xlu1 %v1066_v61, %s2781_s13 }
 0x44b   : > { %v2542_v2 = vpop.f32.mrf.mxu1 }
 0x44d   : > { %v1233_v9 = vpop.f32.mrf.mxu1 }
 0x44e   : > { %1237 = vst.msk [vmem:[#allocation2 + $0x8] sm:$0xff] %vm310_vm0, %v1233_v9 }
 0x44f   : > { %v2552_v15 = vpop.f32.mrf.mxu1 }
 0x456   : > { %v1401_v24 = vpop.f32.mrf.mxu1 }
 0x457   : > { %1406 = vrot.lane.b32.xlu0 %v1401_v24, %s2781_s13 }
 0x458   : > { %v2562_v27 = vpop.f32.mrf.mxu1 }
 0x45a   : > { %v1567_v28 = vpop.f32.mrf.mxu1 }
 0x45b   : > { %1571 = vst.msk [vmem:[#allocation2 + $0x10] sm:$0xff] %vm310_vm0, %v1567_v28 }
 0x45c   : > { %v2572_v33 = vpop.f32.mrf.mxu1 }
 0x45e   : > { %v1735_v36 = vpop.f32.mrf.mxu1 }
 0x45f   : > { %1740 = vrot.lane.b32.xlu1 %v1735_v36, %s2781_s13 }
 0x460   : > { %v2582_v39 = vpop.f32.mrf.mxu1 }
 0x462   : > { %v1901_v41 = vpop.f32.mrf.mxu1 }
 0x463   : > { %1905 = vst.msk [vmem:[#allocation2 + $0x18] sm:$0xff] %vm310_vm0, %v1901_v41 }
 0x464   : > { %v2592_v42 = vpop.f32.mrf.mxu1 }
 0x466   : > { %v2069_v43 = vpop.f32.mrf.mxu1 }
 0x467   : > { %2074 = vrot.lane.b32.xlu0 %v2069_v43, %s2781_s13 }
 0x468   : > { %v2602_v44 = vpop.f32.mrf.mxu1 }
 0x4bc   : > { %v1072_v45 = vpop.permute.xlu1 %1071 }
 0x4bd   : > { %1075 = vst.msk [vmem:[#allocation2] sm:$0xff] %vm1074_vm3, %v1072_v45 }
 0x4c4   : > { %v2078_v48 = vld [vmem:[#allocation2] sm:$0xff] }
 0x4c9   : > { %v1407_v46 = vpop.permute.xlu0 %1406 }
 0x4ca   : > { %1409 = vst.msk [vmem:[#allocation2 + $0x8] sm:$0xff] %vm1074_vm3, %v1407_v46 }
 0x4d1   : > { %v1741_v47 = vpop.permute.xlu1 %1740  ;;  %v2079_v29 = vld [vmem:[#allocation2 + $0x8] sm:$0xff] }
 0x4d2   : > { %1743 = vst.msk [vmem:[#allocation2 + $0x10] sm:$0xff] %vm1074_vm3, %v1741_v47  ;;  %2217 = vmatprep.mubr.f32.mxu0 %v2079_v29 }
 0x4d3   : > { %2218 = vmatmul.mubr.f32.vlgmr.msra.gmra.mxu0 %v2078_v48 }
 0x4d9   : > { %v2075_v49 = vpop.permute.xlu0 %2074  ;;  %v2080_v51 = vld [vmem:[#allocation2 + $0x10] sm:$0xff] }
 0x4da   : > { %2077 = vst.msk [vmem:[#allocation2 + $0x18] sm:$0xff] %vm1074_vm3, %v2075_v49 }
 0x4e1   : > { %v2081_v50 = vld [vmem:[#allocation2 + $0x18] sm:$0xff] }
 0x4e2   : > { %2287 = vmatprep.mubr.f32.mxu1 %v2081_v50 }
 0x4e3   : > { %2288 = vmatmul.mubr.f32.vlgmr.msra.gmra.mxu1 %v2080_v51 }
 0x593   : > { %v2485_v53 = vpop.f32.mrf.mxu0 }
 0x595   : > { %v2486_v54 = vpop.f32.mrf.mxu0 }
 0x596   : > { %v2487_v55 = vadd.f32 %v2486_v54, %v2485_v53 }
 0x598   : > { %v2220_v59 = vadd.f32 %v2487_v55, %v2416_v56 }
 0x5a3   : > { %v2520_v57 = vpop.f32.mrf.mxu1 }
 0x5a5   : > { %v2521_v58 = vpop.f32.mrf.mxu1 }
 0x5a6   : > { %v2522_v60 = vadd.f32 %v2521_v58, %v2520_v57 }
 0x5a8   : > { %v2290_v61 = vadd.f32 %v2522_v60, %v2220_v59 }
 0x5aa   : > { %2293 = vst.msk [vmem:[%s212_s23] sm:$0xff] %vm310_vm0, %v2290_v61 }
 0x5ab   : > { %2725 = shalt.err (!%p2722_p10)
}
 0x5ac   : > { %s2726_s12 = scalar_lea.hbm %s2306_s5, 128  ;;  %s2730_s20 = scalar_lea.hbm %s3608_s4, 256 }
 0x5ad   : > { %p2727_p2 = scmp.ne.s32.totalorder %s2306_s5, %s2726_s12  ;;  %p2731_p7 = scmp.lt.s32.totalorder %s2306_s5, %s3608_s4 }
 0x5ae   : > { %p2732_p0 = scmp.lt.s32.totalorder %s2730_s20, %s2726_s12 }
 0x5af   : > { %p2728_p4 = pnand %p2727_p2, %p3619_p12 }
 0x5b0   : > { %p2733_p6 = por %p2732_p0, %p2731_p7 }
 0x5b1   : > { %p2729_p9 = pneg %p2728_p4 }
 0x5b3   : > { %p2734_p11 = pnand %p2733_p6, %p2729_p9 }
 0x5b5   : > { %2737 = shalt.err (!%p2734_p11)
}
 0x5b6   : > { %2605 = dma.vmem_to_hbm [thread:$0]  (%p3619_p12), %s2309_s25, 128, %s2306_s5, %s2295_s6  }
 0x5b7 PF: > { %s2320_s26 = sand.u32 1, %s2764_s15   ;;  %p3620_p13 = scmp.ne.s32.totalorder %s3614_s28, 0 }
 0x5b8   : > { %p3621_p1 = scmp.ge.s32.totalorder %s2776_s18, 2  ;;  %s2321_s11 = scalar_lea.sflag [#allocation5], %s2320_s26 }
 0x5ba   : > { %p2612_p3 = pnand %p3621_p1, %p3620_p13 }
 0x5bc   : > { %p2613_p5 = pneg %p2612_p3 }
 0x5be   : > { %2759 = dma.done.wait (%p2613_p5), %s2321_s11, 128  }
 0x5bf   : > { %2761 = vsyncadd (%p2613_p5), %s2321_s11, 4294967168  ;;  %p17_p8 = scmp.ge.s32.totalorder %s2833_s21, 4   ;;  %s3622_s15 = smov %s2768_s16 }
 0x5c0   : > { %s3623_s16 = smov %s2772_s17  ;;  %s3624_s17 = smov %s2845_s24 }
 0x5c1   : > { %s3625_s18 = smov %s2833_s21  ;;  %19 = sbr.rel (!%p17_p8) target bundleno = 5 (0x5), region = 81 }
 0x5c6   :  { %2326 = vsyncpa [#allocation4], 1 }
 0x5c7   :  { %2328 = vsyncpa [#allocation4 + $0x1], 1 }
 0x5c8   :  { %2329 = vsyncpa [#allocation5], 1 }
 0x5c9   :  { %2331 = vsyncpa [#allocation5 + $0x1], 1 }

</bundles_post_ra>
